<compile_context>
chip_gen: v6e
topology: v6e:2x2x1
jax: 0.10.0
libtpu: 0.0.40
codegen_flags: <defaults>
</compile_context>

<pallas_src>
import jax
import jax.numpy as jnp
from jax.experimental import pallas as pl
from jax.experimental.pallas import tpu as pltpu

EPS = 1e-5
LANES = 128


def _round_up(v, m):
    return (v + m - 1) // m * m


# ---------------------------------------------------------------------------
# Fused kernel: depthwise 3x3 + BN1 + ReLU + pointwise 1x1 + BN2 + ReLU
# ---------------------------------------------------------------------------
def dws_fused_kernel(x_ref, dw_w_ref, bias1_ref, pw_w_ref, bias2_ref,
                     o_ref, xpad_ref):
    """
    x_ref     : (1, H, W, Cp_in)       one batch element (channel-padded)
    dw_w_ref  : (3, 3, Cp_in)          depthwise filters, BN1 scale pre-folded
    bias1_ref : (1, Cp_in)             folded conv1-bias + BN1 bias
    pw_w_ref  : (Cp_in, Cp_out)        1x1 weights, BN2 scale pre-folded
    bias2_ref : (1, Cp_out)            folded conv2-bias + BN2 bias
    o_ref     : (1, H+2, W+2, Cp_out)  output tile (the 1x1 conv has padding=1)
    xpad_ref  : VMEM (H+2, W+2, Cp_in) scratch in the INPUT dtype
    """
    H, W, Cin = x_ref.shape[1], x_ref.shape[2], x_ref.shape[3]
    Cout = o_ref.shape[3]
    Hp, Wp = H + 2, W + 2
    dt = xpad_ref.dtype

    # ---- zero ONLY the 1-element border frame of the scratch (not the tile) ----
    # Re-zeroed each step (cheap: O((H+W)*C) vs O(H*W*C)) instead of a
    # program_id==0 guard, so correctness does not depend on which core runs
    # which slice of the "parallel" batch axis.
    xpad_ref[pl.ds(0, 1), :, :] = jnp.zeros((1, Wp, Cin), dt)
    xpad_ref[pl.ds(Hp - 1, 1), :, :] = jnp.zeros((1, Wp, Cin), dt)
    xpad_ref[pl.ds(1, H), pl.ds(0, 1), :] = jnp.zeros((H, 1, Cin), dt)
    xpad_ref[pl.ds(1, H), pl.ds(Wp - 1, 1), :] = jnp.zeros((H, 1, Cin), dt)
    # Interior copy in the input dtype (no astype, no HBM copy of padded x).
    xpad_ref[pl.ds(1, H), pl.ds(1, W), :] = x_ref[0]

    # ---- depthwise 3x3: 9 shifted taps from the VMEM scratch, f32 accumulation ----
    # BN1 scale already folded into dw_w (only bias + ReLU here).
    # TODO(synk): on v6e/v7x with bf16 inputs these MACs could run on the bf16 VALU.
    w = dw_w_ref[...].astype(jnp.float32)                             # (3, 3, Cin)
    acc = xpad_ref[pl.ds(0, H), pl.ds(0, W), :].astype(jnp.float32) * w[0, 0, :]
    for dh in range(3):
        for dwi in range(3):
            if dh == 0 and dwi == 0:
                continue
            acc = acc + (xpad_ref[pl.ds(dh, H), pl.ds(dwi, W), :].astype(jnp.float32)
                         * w[dh, dwi, :])
    y = jnp.maximum(acc + bias1_ref[...].astype(jnp.float32), 0.0)    # (H, W, Cin) f32

    # ---- pointwise 1x1 as a channel matmul on the MXU (interior rows only) ----
    # Cast the lhs to the weight dtype so bf16 weights feed the bf16 MXU path;
    # accumulation stays f32 via preferred_element_type.  W is a multiple of 8
    # so this reshape is a pure relabeling (no (8,128) retiling copy).
    y_mm = y.astype(pw_w_ref.dtype).reshape(H * W, Cin)
    z = jnp.dot(y_mm, pw_w_ref[...], preferred_element_type=jnp.float32)
    z = jnp.maximum(z + bias2_ref[...].astype(jnp.float32), 0.0)      # (H*W, Cout)

    # ---- write every output element exactly once (no full-tile pre-fill) ----
    # stage-2 "padding=1" border is exactly relu(bias2), a per-channel constant.
    border = jnp.maximum(bias2_ref[...].astype(jnp.float32), 0.0).astype(o_ref.dtype)
    o_ref[:, pl.ds(0, 1), :, :] = jnp.broadcast_to(border, (1, 1, Wp, Cout))
    o_ref[:, pl.ds(Hp - 1, 1), :, :] = jnp.broadcast_to(border, (1, 1, Wp, Cout))
    o_ref[:, pl.ds(1, H), pl.ds(0, 1), :] = jnp.broadcast_to(border, (1, H, 1, Cout))
    o_ref[:, pl.ds(1, H), pl.ds(Wp - 1, 1), :] = jnp.broadcast_to(border, (1, H, 1, Cout))
    o_ref[:, pl.ds(1, H), pl.ds(1, W), :] = (
        z.reshape(1, H, W, Cout).astype(o_ref.dtype))


# ---------------------------------------------------------------------------
# Wrapper
# ---------------------------------------------------------------------------
def dws_conv_forward(x_nchw, params):
    # NCHW -> NHWC so channels sit on the TPU lane dimension.
    x = jnp.transpose(x_nchw, (0, 2, 3, 1))
    N, H, W, Cin = x.shape
    Cout = params["pw_weight"].shape[1]
    Hp, Wp = H + 2, W + 2

    # Fold BN1 (eval) into the depthwise weights + a per-channel bias.
    scale1 = params["bn1_gamma"] / jnp.sqrt(params["bn1_var"] + EPS)
    dw_w = (params["dw_weight"] * scale1[None, None, :]).astype(x.dtype)
    bias1 = (params["bn1_beta"]
             + scale1 * (params["dw_bias"] - params["bn1_mean"])).reshape(1, Cin)

    # Fold BN2 (eval) into the pointwise weights + a per-channel bias.
    scale2 = params["bn2_gamma"] / jnp.sqrt(params["bn2_var"] + EPS)
    pw_w = (params["pw_weight"] * scale2[None, :]).astype(x.dtype)
    bias2 = (params["bn2_beta"]
             + scale2 * (params["pw_bias"] - params["bn2_mean"])).reshape(1, Cout)

    # Lane-dense channel padding (multiple of 128): unmasked stores everywhere
    # and a non-degenerate MXU contraction.  Padded channels carry exact zeros
    # through both stages (zero weights + zero biases -> relu(0) = 0) and are
    # sliced off below.
    Cp_in = _round_up(Cin, LANES)
    Cp_out = _round_up(Cout, LANES)
    x_p = jnp.pad(x, ((0, 0), (0, 0), (0, 0), (0, Cp_in - Cin)))
    dw_w = jnp.pad(dw_w, ((0, 0), (0, 0), (0, Cp_in - Cin)))
    bias1 = jnp.pad(bias1.astype(jnp.float32), ((0, 0), (0, Cp_in - Cin)))
    pw_w = jnp.pad(pw_w, ((0, Cp_in - Cin), (0, Cp_out - Cout)))
    bias2 = jnp.pad(bias2.astype(jnp.float32), ((0, 0), (0, Cp_out - Cout)))

    out = pl.pallas_call(
        dws_fused_kernel,
        out_shape=jax.ShapeDtypeStruct((N, Hp, Wp, Cp_out), x.dtype),
        grid=(N,),
        in_specs=[
            pl.BlockSpec((1, H, W, Cp_in), lambda n: (n, 0, 0, 0)),
            pl.BlockSpec((3, 3, Cp_in), lambda n: (0, 0, 0)),
            pl.BlockSpec((1, Cp_in), lambda n: (0, 0)),
            pl.BlockSpec((Cp_in, Cp_out), lambda n: (0, 0)),
            pl.BlockSpec((1, Cp_out), lambda n: (0, 0)),
        ],
        out_specs=pl.BlockSpec((1, Hp, Wp, Cp_out), lambda n: (n, 0, 0, 0)),
        scratch_shapes=[pltpu.VMEM((Hp, Wp, Cp_in), x.dtype)],
        compiler_params=pltpu.CompilerParams(
            dimension_semantics=("parallel",),
            vmem_limit_bytes=32 * 1024 * 1024),
    )(x_p, dw_w, bias1, pw_w, bias2)

    # Drop channel padding, NHWC -> NCHW to match the PyTorch module interface.
    return jnp.transpose(out[..., :Cout], (0, 3, 1, 2))


# ---------------------------------------------------------------------------
# Pure-JAX reference (lax.conv) for correctness check
# ---------------------------------------------------------------------------
def ref_forward(x_nchw, p):
    Cin = p["dw_weight"].shape[-1]
    w1 = jnp.transpose(p["dw_weight"], (2, 0, 1))[:, None, :, :]     # (Cin,1,3,3)
    y = jax.lax.conv_general_dilated(
        x_nchw, w1, (1, 1), ((1, 1), (1, 1)),
        dimension_numbers=("NCHW", "OIHW", "NCHW"), feature_group_count=Cin)
    y = y + p["dw_bias"][None, :, None, None]
    y = ((y - p["bn1_mean"][None, :, None, None])
         / jnp.sqrt(p["bn1_var"] + EPS)[None, :, None, None]
         * p["bn1_gamma"][None, :, None, None]
         + p["bn1_beta"][None, :, None, None])
    y = jnp.maximum(y, 0.0)

    w2 = jnp.transpose(p["pw_weight"], (1, 0))[:, :, None, None]     # (Cout,Cin,1,1)
    z = jax.lax.conv_general_dilated(
        y, w2, (1, 1), ((1, 1), (1, 1)),
        dimension_numbers=("NCHW", "OIHW", "NCHW"))
    z = z + p["pw_bias"][None, :, None, None]
    z = ((z - p["bn2_mean"][None, :, None, None])
         / jnp.sqrt(p["bn2_var"] + EPS)[None, :, None, None]
         * p["bn2_gamma"][None, :, None, None]
         + p["bn2_beta"][None, :, None, None])
    return jnp.maximum(z, 0.0)


def init_params(key, in_channels, out_channels):
    ks = jax.random.split(key, 12)
    return {
        "dw_weight": 0.2 * jax.random.normal(ks[0], (3, 3, in_channels), jnp.float32),
        "dw_bias":   0.1 * jax.random.normal(ks[1], (in_channels,), jnp.float32),
        "bn1_gamma": jax.random.uniform(ks[2], (in_channels,), jnp.float32, 0.5, 1.5),
        "bn1_beta":  0.1 * jax.random.normal(ks[3], (in_channels,), jnp.float32),
        "bn1_mean":  0.1 * jax.random.normal(ks[4], (in_channels,), jnp.float32),
        "bn1_var":   jax.random.uniform(ks[5], (in_channels,), jnp.float32, 0.5, 1.5),
        "pw_weight": 0.2 * jax.random.normal(ks[6], (in_channels, out_channels), jnp.float32),
        "pw_bias":   0.1 * jax.random.normal(ks[7], (out_channels,), jnp.float32),
        "bn2_gamma": jax.random.uniform(ks[8], (out_channels,), jnp.float32, 0.5, 1.5),
        "bn2_beta":  0.1 * jax.random.normal(ks[9], (out_channels,), jnp.float32),
        "bn2_mean":  0.1 * jax.random.normal(ks[10], (out_channels,), jnp.float32),
        "bn2_var":   jax.random.uniform(ks[11], (out_channels,), jnp.float32, 0.5, 1.5),
    }


if __name__ == "__main__":
    key = jax.random.PRNGKey(0)
    k_x, k_p = jax.random.split(key)

    N, Cin, Cout, H, W = 2, 4, 8, 16, 16
    x = jax.random.normal(k_x, (N, Cin, H, W), jnp.float32)
    params = init_params(k_p, Cin, Cout)

    out = jax.jit(dws_conv_forward)(x, params)
    out = jax.block_until_ready(out)

    ref = ref_forward(x, params)
    assert out.shape == (N, Cout, H + 2, W + 2), out.shape
    err = float(jnp.max(jnp.abs(out - ref)))
    assert jnp.allclose(out, ref, rtol=1e-4, atol=1e-4), err

    print("KERNEL_OK")
</pallas_src>

<mosaic_0001>
module attributes {stable_mosaic.version = 11 : i64} {
  func.func @dws_fused_kernel(%arg0: i32, %arg1: memref<1x16x16x128xf32, #tpu.memory_space<vmem>>, %arg2: memref<3x3x128xf32, #tpu.memory_space<vmem>>, %arg3: memref<1x128xf32, #tpu.memory_space<vmem>>, %arg4: memref<128x128xf32, #tpu.memory_space<vmem>>, %arg5: memref<1x128xf32, #tpu.memory_space<vmem>>, %arg6: memref<1x18x18x128xf32, #tpu.memory_space<vmem>>, %arg7: memref<18x18x128xf32, #tpu.memory_space<vmem>>) attributes {dimension_semantics = [#tpu.dimension_semantics<parallel>], iteration_bounds = array<i64: 2>, scalar_prefetch = 0 : i64, scratch_operands = 1 : i64, tpu.core_type = #tpu.core_type<tc>, window_params = [{transform_indices = @transform_0, window_bounds = array<i64: 1, 16, 16, 128>}, {pipeline_mode = #tpu.pipeline_mode<synchronous>, transform_indices = @transform_1, window_bounds = array<i64: 3, 3, 128>}, {pipeline_mode = #tpu.pipeline_mode<synchronous>, transform_indices = @transform_2, window_bounds = array<i64: 1, 128>}, {pipeline_mode = #tpu.pipeline_mode<synchronous>, transform_indices = @transform_3, window_bounds = array<i64: 128, 128>}, {pipeline_mode = #tpu.pipeline_mode<synchronous>, transform_indices = @transform_4, window_bounds = array<i64: 1, 128>}, {transform_indices = @transform_5, window_bounds = array<i64: 1, 18, 18, 128>}]} {
    %cst = arith.constant 0.000000e+00 : f32
    %0 = vector.broadcast %cst : f32 to vector<1x18x128xf32>
    %c0 = arith.constant 0 : index
    %c0_0 = arith.constant 0 : index
    %c0_1 = arith.constant 0 : index
    %1 = vector.load %arg7[%c0, %c0_0, %c0_1] : memref<18x18x128xf32, #tpu.memory_space<vmem>>, vector<1x18x128xf32>
    tpu.vector_store %arg7[%c0, %c0_0, %c0_1], %0 {strides = array<i32>} : memref<18x18x128xf32, #tpu.memory_space<vmem>>, vector<1x18x128xf32>,
    %cst_2 = arith.constant 0.000000e+00 : f32
    %2 = vector.broadcast %cst_2 : f32 to vector<1x18x128xf32>
    %c17 = arith.constant 17 : index
    %c0_3 = arith.constant 0 : index
    %c0_4 = arith.constant 0 : index
    %3 = vector.load %arg7[%c17, %c0_3, %c0_4] : memref<18x18x128xf32, #tpu.memory_space<vmem>>, vector<1x18x128xf32>
    tpu.vector_store %arg7[%c17, %c0_3, %c0_4], %2 {strides = array<i32>} : memref<18x18x128xf32, #tpu.memory_space<vmem>>, vector<1x18x128xf32>,
    %cst_5 = arith.constant 0.000000e+00 : f32
    %4 = vector.broadcast %cst_5 : f32 to vector<16x1x128xf32>
    %c1 = arith.constant 1 : index
    %c0_6 = arith.constant 0 : index
    %c0_7 = arith.constant 0 : index
    %5 = vector.load %arg7[%c1, %c0_6, %c0_7] : memref<18x18x128xf32, #tpu.memory_space<vmem>>, vector<16x1x128xf32>
    tpu.vector_store %arg7[%c1, %c0_6, %c0_7], %4 {strides = array<i32>} : memref<18x18x128xf32, #tpu.memory_space<vmem>>, vector<16x1x128xf32>,
    %cst_8 = arith.constant 0.000000e+00 : f32
    %6 = vector.broadcast %cst_8 : f32 to vector<16x1x128xf32>
    %c1_9 = arith.constant 1 : index
    %c17_10 = arith.constant 17 : index
    %c0_11 = arith.constant 0 : index
    %7 = vector.load %arg7[%c1_9, %c17_10, %c0_11] : memref<18x18x128xf32, #tpu.memory_space<vmem>>, vector<16x1x128xf32>
    tpu.vector_store %arg7[%c1_9, %c17_10, %c0_11], %6 {strides = array<i32>} : memref<18x18x128xf32, #tpu.memory_space<vmem>>, vector<16x1x128xf32>,
    %c0_12 = arith.constant 0 : index
    %c0_13 = arith.constant 0 : index
    %c0_14 = arith.constant 0 : index
    %c0_15 = arith.constant 0 : index
    %8 = vector.load %arg1[%c0_12, %c0_13, %c0_14, %c0_15] : memref<1x16x16x128xf32, #tpu.memory_space<vmem>>, vector<1x16x16x128xf32>
    %9 = vector.shape_cast %8 : vector<1x16x16x128xf32> to vector<16x16x128xf32>
    %c1_16 = arith.constant 1 : index
    %c1_17 = arith.constant 1 : index
    %c0_18 = arith.constant 0 : index
    %10 = vector.load %arg7[%c1_16, %c1_17, %c0_18] : memref<18x18x128xf32, #tpu.memory_space<vmem>>, vector<16x16x128xf32>
    tpu.vector_store %arg7[%c1_16, %c1_17, %c0_18], %9 {strides = array<i32>} : memref<18x18x128xf32, #tpu.memory_space<vmem>>, vector<16x16x128xf32>,
    %c0_19 = arith.constant 0 : index
    %c0_20 = arith.constant 0 : index
    %c0_21 = arith.constant 0 : index
    %11 = vector.load %arg2[%c0_19, %c0_20, %c0_21] : memref<3x3x128xf32, #tpu.memory_space<vmem>>, vector<3x3x128xf32>
    %c0_22 = arith.constant 0 : index
    %c0_23 = arith.constant 0 : index
    %c0_24 = arith.constant 0 : index
    %12 = vector.load %arg7[%c0_22, %c0_23, %c0_24] : memref<18x18x128xf32, #tpu.memory_space<vmem>>, vector<16x16x128xf32>
    %13 = vector.extract_strided_slice %11 {offsets = [0, 0, 0], sizes = [1, 1, 128], strides = [1, 1, 1]} : vector<3x3x128xf32> to vector<1x1x128xf32>
    %14 = vector.shape_cast %13 : vector<1x1x128xf32> to vector<128xf32>
    %15 = vector.shape_cast %14 : vector<128xf32> to vector<1x1x128xf32>
    %16 = vector.broadcast %15 : vector<1x1x128xf32> to vector<16x16x128xf32>
    %17 = arith.mulf %12, %16 : vector<16x16x128xf32>
    %c0_25 = arith.constant 0 : index
    %c1_26 = arith.constant 1 : index
    %c0_27 = arith.constant 0 : index
    %18 = vector.load %arg7[%c0_25, %c1_26, %c0_27] : memref<18x18x128xf32, #tpu.memory_space<vmem>>, vector<16x16x128xf32>
    %19 = vector.extract_strided_slice %11 {offsets = [0, 1, 0], sizes = [1, 1, 128], strides = [1, 1, 1]} : vector<3x3x128xf32> to vector<1x1x128xf32>
    %20 = vector.shape_cast %19 : vector<1x1x128xf32> to vector<128xf32>
    %21 = vector.shape_cast %20 : vector<128xf32> to vector<1x1x128xf32>
    %22 = vector.broadcast %21 : vector<1x1x128xf32> to vector<16x16x128xf32>
    %23 = arith.mulf %18, %22 : vector<16x16x128xf32>
    %24 = arith.addf %17, %23 : vector<16x16x128xf32>
    %c0_28 = arith.constant 0 : index
    %c2 = arith.constant 2 : index
    %c0_29 = arith.constant 0 : index
    %25 = vector.load %arg7[%c0_28, %c2, %c0_29] : memref<18x18x128xf32, #tpu.memory_space<vmem>>, vector<16x16x128xf32>
    %26 = vector.extract_strided_slice %11 {offsets = [0, 2, 0], sizes = [1, 1, 128], strides = [1, 1, 1]} : vector<3x3x128xf32> to vector<1x1x128xf32>
    %27 = vector.shape_cast %26 : vector<1x1x128xf32> to vector<128xf32>
    %28 = vector.shape_cast %27 : vector<128xf32> to vector<1x1x128xf32>
    %29 = vector.broadcast %28 : vector<1x1x128xf32> to vector<16x16x128xf32>
    %30 = arith.mulf %25, %29 : vector<16x16x128xf32>
    %31 = arith.addf %24, %30 : vector<16x16x128xf32>
    %c1_30 = arith.constant 1 : index
    %c0_31 = arith.constant 0 : index
    %c0_32 = arith.constant 0 : index
    %32 = vector.load %arg7[%c1_30, %c0_31, %c0_32] : memref<18x18x128xf32, #tpu.memory_space<vmem>>, vector<16x16x128xf32>
    %33 = vector.extract_strided_slice %11 {offsets = [1, 0, 0], sizes = [1, 1, 128], strides = [1, 1, 1]} : vector<3x3x128xf32> to vector<1x1x128xf32>
    %34 = vector.shape_cast %33 : vector<1x1x128xf32> to vector<128xf32>
    %35 = vector.shape_cast %34 : vector<128xf32> to vector<1x1x128xf32>
    %36 = vector.broadcast %35 : vector<1x1x128xf32> to vector<16x16x128xf32>
    %37 = arith.mulf %32, %36 : vector<16x16x128xf32>
    %38 = arith.addf %31, %37 : vector<16x16x128xf32>
    %c1_33 = arith.constant 1 : index
    %c1_34 = arith.constant 1 : index
    %c0_35 = arith.constant 0 : index
    %39 = vector.load %arg7[%c1_33, %c1_34, %c0_35] : memref<18x18x128xf32, #tpu.memory_space<vmem>>, vector<16x16x128xf32>
    %40 = vector.extract_strided_slice %11 {offsets = [1, 1, 0], sizes = [1, 1, 128], strides = [1, 1, 1]} : vector<3x3x128xf32> to vector<1x1x128xf32>
    %41 = vector.shape_cast %40 : vector<1x1x128xf32> to vector<128xf32>
    %42 = vector.shape_cast %41 : vector<128xf32> to vector<1x1x128xf32>
    %43 = vector.broadcast %42 : vector<1x1x128xf32> to vector<16x16x128xf32>
    %44 = arith.mulf %39, %43 : vector<16x16x128xf32>
    %45 = arith.addf %38, %44 : vector<16x16x128xf32>
    %c1_36 = arith.constant 1 : index
    %c2_37 = arith.constant 2 : index
    %c0_38 = arith.constant 0 : index
    %46 = vector.load %arg7[%c1_36, %c2_37, %c0_38] : memref<18x18x128xf32, #tpu.memory_space<vmem>>, vector<16x16x128xf32>
    %47 = vector.extract_strided_slice %11 {offsets = [1, 2, 0], sizes = [1, 1, 128], strides = [1, 1, 1]} : vector<3x3x128xf32> to vector<1x1x128xf32>
    %48 = vector.shape_cast %47 : vector<1x1x128xf32> to vector<128xf32>
    %49 = vector.shape_cast %48 : vector<128xf32> to vector<1x1x128xf32>
    %50 = vector.broadcast %49 : vector<1x1x128xf32> to vector<16x16x128xf32>
    %51 = arith.mulf %46, %50 : vector<16x16x128xf32>
    %52 = arith.addf %45, %51 : vector<16x16x128xf32>
    %c2_39 = arith.constant 2 : index
    %c0_40 = arith.constant 0 : index
    %c0_41 = arith.constant 0 : index
    %53 = vector.load %arg7[%c2_39, %c0_40, %c0_41] : memref<18x18x128xf32, #tpu.memory_space<vmem>>, vector<16x16x128xf32>
    %54 = vector.extract_strided_slice %11 {offsets = [2, 0, 0], sizes = [1, 1, 128], strides = [1, 1, 1]} : vector<3x3x128xf32> to vector<1x1x128xf32>
    %55 = vector.shape_cast %54 : vector<1x1x128xf32> to vector<128xf32>
    %56 = vector.shape_cast %55 : vector<128xf32> to vector<1x1x128xf32>
    %57 = vector.broadcast %56 : vector<1x1x128xf32> to vector<16x16x128xf32>
    %58 = arith.mulf %53, %57 : vector<16x16x128xf32>
    %59 = arith.addf %52, %58 : vector<16x16x128xf32>
    %c2_42 = arith.constant 2 : index
    %c1_43 = arith.constant 1 : index
    %c0_44 = arith.constant 0 : index
    %60 = vector.load %arg7[%c2_42, %c1_43, %c0_44] : memref<18x18x128xf32, #tpu.memory_space<vmem>>, vector<16x16x128xf32>
    %61 = vector.extract_strided_slice %11 {offsets = [2, 1, 0], sizes = [1, 1, 128], strides = [1, 1, 1]} : vector<3x3x128xf32> to vector<1x1x128xf32>
    %62 = vector.shape_cast %61 : vector<1x1x128xf32> to vector<128xf32>
    %63 = vector.shape_cast %62 : vector<128xf32> to vector<1x1x128xf32>
    %64 = vector.broadcast %63 : vector<1x1x128xf32> to vector<16x16x128xf32>
    %65 = arith.mulf %60, %64 : vector<16x16x128xf32>
    %66 = arith.addf %59, %65 : vector<16x16x128xf32>
    %c2_45 = arith.constant 2 : index
    %c2_46 = arith.constant 2 : index
    %c0_47 = arith.constant 0 : index
    %67 = vector.load %arg7[%c2_45, %c2_46, %c0_47] : memref<18x18x128xf32, #tpu.memory_space<vmem>>, vector<16x16x128xf32>
    %68 = vector.extract_strided_slice %11 {offsets = [2, 2, 0], sizes = [1, 1, 128], strides = [1, 1, 1]} : vector<3x3x128xf32> to vector<1x1x128xf32>
    %69 = vector.shape_cast %68 : vector<1x1x128xf32> to vector<128xf32>
    %70 = vector.shape_cast %69 : vector<128xf32> to vector<1x1x128xf32>
    %71 = vector.broadcast %70 : vector<1x1x128xf32> to vector<16x16x128xf32>
    %72 = arith.mulf %67, %71 : vector<16x16x128xf32>
    %73 = arith.addf %66, %72 : vector<16x16x128xf32>
    %c0_48 = arith.constant 0 : index
    %c0_49 = arith.constant 0 : index
    %74 = vector.load %arg3[%c0_48, %c0_49] : memref<1x128xf32, #tpu.memory_space<vmem>>, vector<1x128xf32>
    %75 = vector.shape_cast %74 : vector<1x128xf32> to vector<1x1x128xf32>
    %76 = vector.broadcast %75 : vector<1x1x128xf32> to vector<16x16x128xf32>
    %77 = arith.addf %73, %76 : vector<16x16x128xf32>
    %cst_50 = arith.constant 0.000000e+00 : f32
    %78 = vector.broadcast %cst_50 : f32 to vector<16x16x128xf32>
    %79 = arith.maximumf %77, %78 : vector<16x16x128xf32>
    %80 = vector.shape_cast %79 : vector<16x16x128xf32> to vector<256x128xf32>
    %c0_51 = arith.constant 0 : index
    %c0_52 = arith.constant 0 : index
    %81 = vector.load %arg4[%c0_51, %c0_52] : memref<128x128xf32, #tpu.memory_space<vmem>>, vector<128x128xf32>
    %cst_53 = arith.constant dense<0.000000e+00> : vector<256x128xf32>
    %82 = tpu.matmul %80, %81, %cst_53 {dimension_numbers = #tpu.dot_dimension_numbers<[1], [0], [0], [1], [0, 0, 1, 1], [], []>} : vector<256x128xf32>, vector<128x128xf32>, vector<256x128xf32> -> vector<256x128xf32>
    %c0_54 = arith.constant 0 : index
    %c0_55 = arith.constant 0 : index
    %83 = vector.load %arg5[%c0_54, %c0_55] : memref<1x128xf32, #tpu.memory_space<vmem>>, vector<1x128xf32>
    %84 = vector.broadcast %83 : vector<1x128xf32> to vector<256x128xf32>
    %85 = arith.addf %82, %84 : vector<256x128xf32>
    %cst_56 = arith.constant 0.000000e+00 : f32
    %86 = vector.broadcast %cst_56 : f32 to vector<256x128xf32>
    %87 = arith.maximumf %85, %86 : vector<256x128xf32>
    %c0_57 = arith.constant 0 : index
    %c0_58 = arith.constant 0 : index
    %88 = vector.load %arg5[%c0_57, %c0_58] : memref<1x128xf32, #tpu.memory_space<vmem>>, vector<1x128xf32>
    %cst_59 = arith.constant 0.000000e+00 : f32
    %89 = vector.broadcast %cst_59 : f32 to vector<1x128xf32>
    %90 = arith.maximumf %88, %89 : vector<1x128xf32>
    %91 = vector.shape_cast %90 : vector<1x128xf32> to vector<1x1x1x128xf32>
    %92 = vector.broadcast %91 : vector<1x1x1x128xf32> to vector<1x1x18x128xf32>
    %c0_60 = arith.constant 0 : index
    %c0_61 = arith.constant 0 : index
    %c0_62 = arith.constant 0 : index
    %c0_63 = arith.constant 0 : index
    %93 = vector.load %arg6[%c0_60, %c0_61, %c0_62, %c0_63] : memref<1x18x18x128xf32, #tpu.memory_space<vmem>>, vector<1x1x18x128xf32>
    tpu.vector_store %arg6[%c0_60, %c0_61, %c0_62, %c0_63], %92 {strides = array<i32>} : memref<1x18x18x128xf32, #tpu.memory_space<vmem>>, vector<1x1x18x128xf32>,
    %94 = vector.shape_cast %90 : vector<1x128xf32> to vector<1x1x1x128xf32>
    %95 = vector.broadcast %94 : vector<1x1x1x128xf32> to vector<1x1x18x128xf32>
    %c0_64 = arith.constant 0 : index
    %c17_65 = arith.constant 17 : index
    %c0_66 = arith.constant 0 : index
    %c0_67 = arith.constant 0 : index
    %96 = vector.load %arg6[%c0_64, %c17_65, %c0_66, %c0_67] : memref<1x18x18x128xf32, #tpu.memory_space<vmem>>, vector<1x1x18x128xf32>
    tpu.vector_store %arg6[%c0_64, %c17_65, %c0_66, %c0_67], %95 {strides = array<i32>} : memref<1x18x18x128xf32, #tpu.memory_space<vmem>>, vector<1x1x18x128xf32>,
    %97 = vector.shape_cast %90 : vector<1x128xf32> to vector<1x1x1x128xf32>
    %98 = vector.broadcast %97 : vector<1x1x1x128xf32> to vector<1x16x1x128xf32>
    %c0_68 = arith.constant 0 : index
    %c1_69 = arith.constant 1 : index
    %c0_70 = arith.constant 0 : index
    %c0_71 = arith.constant 0 : index
    %99 = vector.load %arg6[%c0_68, %c1_69, %c0_70, %c0_71] : memref<1x18x18x128xf32, #tpu.memory_space<vmem>>, vector<1x16x1x128xf32>
    tpu.vector_store %arg6[%c0_68, %c1_69, %c0_70, %c0_71], %98 {strides = array<i32>} : memref<1x18x18x128xf32, #tpu.memory_space<vmem>>, vector<1x16x1x128xf32>,
    %100 = vector.shape_cast %90 : vector<1x128xf32> to vector<1x1x1x128xf32>
    %101 = vector.broadcast %100 : vector<1x1x1x128xf32> to vector<1x16x1x128xf32>
    %c0_72 = arith.constant 0 : index
    %c1_73 = arith.constant 1 : index
    %c17_74 = arith.constant 17 : index
    %c0_75 = arith.constant 0 : index
    %102 = vector.load %arg6[%c0_72, %c1_73, %c17_74, %c0_75] : memref<1x18x18x128xf32, #tpu.memory_space<vmem>>, vector<1x16x1x128xf32>
    tpu.vector_store %arg6[%c0_72, %c1_73, %c17_74, %c0_75], %101 {strides = array<i32>} : memref<1x18x18x128xf32, #tpu.memory_space<vmem>>, vector<1x16x1x128xf32>,
    %103 = vector.shape_cast %87 : vector<256x128xf32> to vector<1x16x16x128xf32>
    %c0_76 = arith.constant 0 : index
    %c1_77 = arith.constant 1 : index
    %c1_78 = arith.constant 1 : index
    %c0_79 = arith.constant 0 : index
    %104 = vector.load %arg6[%c0_76, %c1_77, %c1_78, %c0_79] : memref<1x18x18x128xf32, #tpu.memory_space<vmem>>, vector<1x16x16x128xf32>
    tpu.vector_store %arg6[%c0_76, %c1_77, %c1_78, %c0_79], %103 {strides = array<i32>} : memref<1x18x18x128xf32, #tpu.memory_space<vmem>>, vector<1x16x16x128xf32>,
    return
  }
  func.func @transform_0(%arg0: i32) -> (i32, i32, i32, i32) {
    %c0_i32 = arith.constant 0 : i32
    %c0_i32_0 = arith.constant 0 : i32
    %c0_i32_1 = arith.constant 0 : i32
    %c0_i32_2 = arith.constant 0 : i32
    return %arg0, %c0_i32, %c0_i32_0, %c0_i32_1 : i32, i32, i32, i32
  }
  func.func @transform_1(%arg0: i32) -> (i32, i32, i32) {
    %c0_i32 = arith.constant 0 : i32
    %c0_i32_0 = arith.constant 0 : i32
    %c0_i32_1 = arith.constant 0 : i32
    %c0_i32_2 = arith.constant 0 : i32
    return %c0_i32, %c0_i32_0, %c0_i32_1 : i32, i32, i32
  }
  func.func @transform_2(%arg0: i32) -> (i32, i32) {
    %c0_i32 = arith.constant 0 : i32
    %c0_i32_0 = arith.constant 0 : i32
    %c0_i32_1 = arith.constant 0 : i32
    return %c0_i32, %c0_i32_0 : i32, i32
  }
  func.func @transform_3(%arg0: i32) -> (i32, i32) {
    %c0_i32 = arith.constant 0 : i32
    %c0_i32_0 = arith.constant 0 : i32
    %c0_i32_1 = arith.constant 0 : i32
    return %c0_i32, %c0_i32_0 : i32, i32
  }
  func.func @transform_4(%arg0: i32) -> (i32, i32) {
    %c0_i32 = arith.constant 0 : i32
    %c0_i32_0 = arith.constant 0 : i32
    %c0_i32_1 = arith.constant 0 : i32
    return %c0_i32, %c0_i32_0 : i32, i32
  }
  func.func @transform_5(%arg0: i32) -> (i32, i32, i32, i32) {
    %c0_i32 = arith.constant 0 : i32
    %c0_i32_0 = arith.constant 0 : i32
    %c0_i32_1 = arith.constant 0 : i32
    %c0_i32_2 = arith.constant 0 : i32
    return %arg0, %c0_i32, %c0_i32_0, %c0_i32_1 : i32, i32, i32, i32
  }
}

</mosaic_0001>

<bundles_post_ra>
// kernel: dws_conv_forward.1
= control target key start
LH: loop header
LB: loop body
LE: loop exit
PB: predicated region body
PF: predicated region fallthrough
CT: control target
= control target key end

     0   :  { %s1983_s18 = smov 0   ;;  %s3078_s0 = inlined_call_operand.vmem [shape: f32[2,16,16,128], index: 0, kind: input, shape index: {}]   ;;  %s3079_s1 = inlined_call_operand.vmem [shape: f32[3,3,128], index: 1, kind: input, shape index: {}]   ;;  %s3080_s2 = inlined_call_operand.vmem [shape: f32[1,128], index: 2, kind: input, shape index: {}]   ;;  %s3081_s3 = inlined_call_operand.vmem [shape: f32[128,128], index: 3, kind: input, shape index: {}]   ;;  %s3082_s4 = inlined_call_operand.vmem [shape: f32[1,128], index: 4, kind: input, shape index: {}]   ;;  %s3083_s5 = inlined_call_operand.vmem [shape: f32[2,18,18,128], index: 5, kind: output, shape index: {}]  }
   0x1 LB: > { %s1686_s19 = sadd.s32 4294967295, %s1950_s18   ;;  %p1690_p0 = scmp.ge.s32.totalorder %s1950_s18, 1  ;;  %s1950_s18 = sphi %s1983_s18, %s15_s18  }
   0x2   : > { %p187_p1 = scmp.lt.s32.totalorder %s1950_s18, 3 }
   0x4   : > { %p188_p2 = pnand %p1690_p0, %p187_p1 }
   0x6   : > { %191 = sbr.rel (%p188_p2) target bundleno = 405 (0x195), region = 40 }
   0xb   : > { %v1287_v0 = vld [vmem:[%s3081_s3 + $0x78] sm:$0xff]  ;;  %v1286_v1 = vld [vmem:[%s3081_s3 + $0x70] sm:$0xff]  ;;  %p1999_p3 = scmp.lt.s32.totalorder %s1686_s19, 1  ;;  %v364_v2 = vlaneseq  ;;  %v1952_v3 = vmov 0.0   ;;  %v1285_v4 = vld [vmem:[%s3081_s3 + $0x68] sm:$0xff] }
   0xc   : > { %1813 = vmatprep.subr.mxu0 %v1287_v0  ;;  %1893 = vmatprep.subr.mxu1 %v1287_v0  ;;  %225 = vst [vmem:[#allocation2] sm:$0xff] %v1952_v3  ;;  %226 = vst [vmem:[#allocation2 + $0x8] sm:$0xff] %v1952_v3  ;;  %v1284_v6 = vld [vmem:[%s3081_s3 + $0x60] sm:$0xff]  ;;  %v1283_v8 = vld [vmem:[%s3081_s3 + $0x58] sm:$0xff] }
   0xd   : > { %233 = vst [vmem:[#allocation2 + $0x18] sm:$0x1] %v1952_v3  ;;  %234 = vst [vmem:[#allocation2 + $0x30] sm:$0x1] %v1952_v3  ;;  %1814 = vmatpush3.msra.mxu0 %v1287_v0  ;;  %1909 = vmatpush3.msra.mxu1 %v1287_v0  ;;  %s3140_s19 = smov (!%p1999_p3, %s1686_s19), 1  ;;  %v365_v5 = vshrl.u32 %v364_v2, 7 }
   0xe   : > { %227 = vst [vmem:[#allocation2 + $0x10] sm:$0x3] %v1952_v3  ;;  %229 = vst [vmem:[#allocation2 + $0x198] sm:$0xff] %v1952_v3  ;;  %1815 = vmatprep.subr.mxu0 %v1286_v1  ;;  %1894 = vmatprep.subr.mxu1 %v1286_v1  ;;  %s1764_s29 = sshll.u32 %s3140_s19, 8  ;;  %v329_v9 = vld [vmem:[%s3079_s1] sm:$0x7] }
   0xf   : > { %230 = vst [vmem:[#allocation2 + $0x1a0] sm:$0xff] %v1952_v3  ;;  %231 = vst [vmem:[#allocation2 + $0x1a8] sm:$0x3] %v1952_v3  ;;  %1816 = vmatpush3.msra.mxu0 %v1286_v1  ;;  %1910 = vmatpush3.msra.mxu1 %v1286_v1  ;;  %v2016_v7 = vsub.s32 0, %v365_v5  ;;  %s2024_s9 = scalar_lea.vmem %s3078_s0, %s1764_s29  ;;  %v330_v10 = vld [vmem:[%s3079_s1 + $0x4] sm:$0x7] }
  0x10   : > { %235 = vst [vmem:[#allocation2 + $0x48] sm:$0x1] %v1952_v3  ;;  %236 = vst [vmem:[#allocation2 + $0x60] sm:$0x1] %v1952_v3  ;;  %1817 = vmatprep.subr.mxu0 %v1285_v4  ;;  %1895 = vmatprep.subr.mxu1 %v1285_v4  ;;  %v434_v11 = vsub.s32 1, %v365_v5  ;;  %v2033_v12 = vld [vmem:[%s2024_s9] sm:$0xff] }
  0x11   : > { %237 = vst [vmem:[#allocation2 + $0x78] sm:$0x1] %v1952_v3  ;;  %238 = vst [vmem:[#allocation2 + $0x90] sm:$0x1] %v1952_v3  ;;  %1818 = vmatpush3.msra.mxu0 %v1285_v4  ;;  %1911 = vmatpush3.msra.mxu1 %v1285_v4  ;;  %v2036_v13 = vld [vmem:[%s2024_s9 + $0x8] sm:$0xff]  ;;  %v2039_v14 = vld [vmem:[%s2024_s9 + $0x10] sm:$0xff]  ;;  %v2042_v15 = vrot.slane %v329_v9, %v2016_v7  ;;  %v2069_v29 = vrot.slane %v330_v10, %v2016_v7 }
  0x12   : > { %239 = vst [vmem:[#allocation2 + $0xa8] sm:$0x1] %v1952_v3  ;;  %240 = vst [vmem:[#allocation2 + $0xc0] sm:$0x1] %v1952_v3  ;;  %v534_v16 = vsub.s32 2, %v365_v5  ;;  %1819 = vmatprep.subr.mxu0 %v1284_v6  ;;  %1896 = vmatprep.subr.mxu1 %v1284_v6  ;;  %v1282_v17 = vld [vmem:[%s3081_s3 + $0x50] sm:$0xff]  ;;  %v2056_v20 = vrot.slane %v329_v9, %v434_v11  ;;  %v2058_v21 = vrot.slane %v330_v10, %v434_v11 }
  0x13   : > { %241 = vst [vmem:[#allocation2 + $0xd8] sm:$0x1] %v1952_v3  ;;  %242 = vst [vmem:[#allocation2 + $0xf0] sm:$0x1] %v1952_v3  ;;  %v2048_v18 = vld [vmem:[%s2024_s9 + $0x18] sm:$0xff]  ;;  %1820 = vmatpush3.msra.mxu0 %v1284_v6  ;;  %1912 = vmatpush3.msra.mxu1 %v1284_v6  ;;  %v1281_v22 = vld [vmem:[%s3081_s3 + $0x48] sm:$0xff] }
  0x14   : > { %243 = vst [vmem:[#allocation2 + $0x108] sm:$0x1] %v1952_v3  ;;  %244 = vst [vmem:[#allocation2 + $0x120] sm:$0x1] %v1952_v3  ;;  %v331_v19 = vld [vmem:[%s3079_s1 + $0x8] sm:$0x7]  ;;  %v2065_v26 = vrot.slane %v329_v9, %v534_v16  ;;  %1821 = vmatprep.subr.mxu0 %v1283_v8  ;;  %1897 = vmatprep.subr.mxu1 %v1283_v8  ;;  %v2071_v30 = vrot.slane %v330_v10, %v534_v16 }
  0x15   : > { %245 = vst [vmem:[#allocation2 + $0x138] sm:$0x1] %v1952_v3  ;;  %246 = vst [vmem:[#allocation2 + $0x150] sm:$0x1] %v1952_v3  ;;  %v368_v23 = vmul.f32 0.0, %v2042_v15  ;;  %v400_v24 = vld [vmem:[#allocation2 + $0x1] sm:$0xff]  ;;  %1822 = vmatpush3.msra.mxu0 %v1283_v8  ;;  %1913 = vmatpush3.msra.mxu1 %v1283_v8  ;;  %v2081_v36 = vmul.f32 %v2058_v21, %v2033_v12  ;;  %v2083_v37 = vrot.slane %v331_v19, %v434_v11 }
  0x16   : > { %247 = vst [vmem:[#allocation2 + $0x168] sm:$0x1] %v1952_v3  ;;  %248 = vst [vmem:[#allocation2 + $0x180] sm:$0x1] %v1952_v3  ;;  %v500_v25 = vld [vmem:[#allocation2 + $0x2] sm:$0xff]  ;;  %v436_v28 = vmul.f32 %v2056_v20, %v400_v24  ;;  %v501_v31 = vld [vmem:[#allocation2 + $0xa] sm:$0xff]  ;;  %1823 = vmatprep.subr.mxu0 %v1282_v17  ;;  %1898 = vmatprep.subr.mxu1 %v1282_v17  ;;  %v2095_v42 = vrot.slane %v331_v19, %v2016_v7 }
  0x17   : > { %249 = vst [vmem:[#allocation2 + $0x29] sm:$0x1] %v1952_v3  ;;  %250 = vst [vmem:[#allocation2 + $0x41] sm:$0x1] %v1952_v3  ;;  %v401_v27 = vld [vmem:[#allocation2 + $0x9] sm:$0xff]  ;;  %v280_v33 = vld [vmem:[%s2024_s9 + $0x78] sm:$0xff]  ;;  %v536_v35 = vmul.f32 %v2065_v26, %v500_v25  ;;  %1824 = vmatpush3.msra.mxu0 %v1282_v17  ;;  %1914 = vmatpush3.msra.mxu1 %v1282_v17  ;;  %v2112_v47 = vmul.f32 %v2083_v37, %v2039_v14 }
  0x18   : > { %251 = vst [vmem:[#allocation2 + $0x59] sm:$0x1] %v1952_v3  ;;  %252 = vst [vmem:[#allocation2 + $0x71] sm:$0x1] %v1952_v3  ;;  %v279_v32 = vld [vmem:[%s2024_s9 + $0x70] sm:$0xff]  ;;  %v1280_v34 = vld [vmem:[%s3081_s3 + $0x40] sm:$0xff]  ;;  %v468_v41 = vadd.f32 %v436_v28, %v368_v23  ;;  %v437_v43 = vmul.f32 %v2056_v20, %v401_v27  ;;  %v2114_v48 = vrot.slane %v331_v19, %v534_v16  ;;  %1825 = vmatprep.subr.mxu0 %v1281_v22 }
  0x19   : > { %253 = vst [vmem:[#allocation2 + $0x89] sm:$0x1] %v1952_v3  ;;  %254 = vst [vmem:[#allocation2 + $0xa1] sm:$0x1] %v1952_v3  ;;  %v2086_v38 = vld [vmem:[%s2024_s9 + $0x80] sm:$0xff]  ;;  %v2089_v39 = vld [vmem:[%s2024_s9 + $0x88] sm:$0xff]  ;;  %v537_v49 = vmul.f32 %v2065_v26, %v501_v31  ;;  %1899 = vmatprep.subr.mxu1 %v1281_v22  ;;  %v737_v55 = vmul.f32 %v2058_v21, %v2036_v13  ;;  %1826 = vmatpush3.msra.mxu0 %v1281_v22 }
  0x1a   : > { %255 = vst [vmem:[#allocation2 + $0xb9] sm:$0x1] %v1952_v3  ;;  %256 = vst [vmem:[#allocation2 + $0xd1] sm:$0x1] %v1952_v3  ;;  %v2092_v40 = vld [vmem:[%s2024_s9 + $0x90] sm:$0xff]  ;;  %v2099_v44 = vld [vmem:[%s2024_s9 + $0x98] sm:$0xff]  ;;  %v568_v53 = vadd.f32 %v536_v35, %v468_v41  ;;  %v469_v54 = vadd.f32 %v437_v43, %v368_v23  ;;  %1915 = vmatpush3.msra.mxu1 %v1281_v22  ;;  %v2150_v61 = vmul.f32 %v2083_v37, %v2048_v18 }
  0x1b   : > { %257 = vst [vmem:[#allocation2 + $0xe9] sm:$0x1] %v1952_v3  ;;  %258 = vst [vmem:[#allocation2 + $0x101] sm:$0x1] %v1952_v3  ;;  %v2105_v45 = vld [vmem:[%s2024_s9 + $0x20] sm:$0xff]  ;;  %v2108_v46 = vld [vmem:[%s2024_s9 + $0x28] sm:$0xff]  ;;  %v452_v62 = vmul.f32 %v2056_v20, %v279_v32  ;;  %v2155_v63 = vmul.f32 %v2058_v21, %v2086_v38  ;;  %1827 = vmatprep.subr.mxu0 %v1280_v34  ;;  %1900 = vmatprep.subr.mxu1 %v1280_v34 }
  0x1c   : > { %259 = vst [vmem:[#allocation2 + $0x119] sm:$0x1] %v1952_v3  ;;  %260 = vst [vmem:[#allocation2 + $0x131] sm:$0x1] %v1952_v3  ;;  %v2121_v50 = vld [vmem:[%s2024_s9 + $0xa0] sm:$0xff]  ;;  %v2124_v51 = vld [vmem:[%s2024_s9 + $0xa8] sm:$0xff]  ;;  %v2171_v4 = vmul.f32 %v2083_v37, %v2092_v40  ;;  %v2174_v5 = vmul.f32 %v2056_v20, %v280_v33  ;;  %1828 = vmatpush3.msra.mxu0 %v1280_v34  ;;  %1916 = vmatpush3.msra.mxu1 %v1280_v34 }
  0x1d   : > { %261 = vst [vmem:[#allocation2 + $0x149] sm:$0x1] %v1952_v3  ;;  %262 = vst [vmem:[#allocation2 + $0x161] sm:$0x1] %v1952_v3  ;;  %v2127_v52 = vld [vmem:[%s2024_s9 + $0x30] sm:$0xff]  ;;  %v2134_v56 = vld [vmem:[%s2024_s9 + $0x38] sm:$0xff]  ;;  %v569_v10 = vadd.f32 %v537_v49, %v469_v54 }
  0x1e   : > { %263 = vst [vmem:[#allocation2 + $0x179] sm:$0x1] %v1952_v3  ;;  %264 = vst [vmem:[#allocation2 + $0x191] sm:$0x1] %v1952_v3  ;;  %v2138_v57 = vld [vmem:[%s2024_s9 + $0xb0] sm:$0xff]  ;;  %v2141_v58 = vld [vmem:[%s2024_s9 + $0xb8] sm:$0xff] }
  0x1f   : > { %3111 = vst [vmem:[#allocation3_spill] sm:$0xff] %v2016_v7  ;;  %297 = vst [vmem:[#allocation2 + $0x19] sm:$0xff] %v2033_v12  ;;  %v1279_v59 = vld [vmem:[%s3081_s3 + $0x38] sm:$0xff]  ;;  %v1278_v0 = vld [vmem:[%s3081_s3 + $0x30] sm:$0xff]  ;;  %s1925_s21 = smul.u32 432, %s3140_s19 }
  0x20   : > { %298 = vst [vmem:[#allocation2 + $0x21] sm:$0xff] %v2036_v13  ;;  %299 = vst [vmem:[#allocation2 + $0x31] sm:$0xff] %v2039_v14  ;;  %v2185_v16 = vld [vmem:[%s2024_s9 + $0x40] sm:$0xff]  ;;  %1829 = vmatprep.subr.mxu0 %v1279_v59  ;;  %1901 = vmatprep.subr.mxu1 %v1279_v59  ;;  %v1277_v27 = vld [vmem:[%s3081_s3 + $0x28] sm:$0xff] }
  0x21   : > { %300 = vst [vmem:[#allocation2 + $0x39] sm:$0xff] %v2048_v18  ;;  %311 = vst [vmem:[#allocation2 + $0xc1] sm:$0xff] %v279_v32  ;;  %1830 = vmatpush3.msra.mxu0 %v1279_v59  ;;  %1917 = vmatpush3.msra.mxu1 %v1279_v59  ;;  %v1276_v35 = vld [vmem:[%s3081_s3 + $0x20] sm:$0xff]  ;;  %s2956_s25 = scalar_lea.vmem %s3083_s5, %s1925_s21 }
  0x22   : > { %312 = vst [vmem:[#allocation2 + $0xc9] sm:$0xff] %v280_v33  ;;  %313 = vst [vmem:[#allocation2 + $0xd9] sm:$0xff] %v2086_v38  ;;  %1831 = vmatprep.subr.mxu0 %v1278_v0  ;;  %1902 = vmatprep.subr.mxu1 %v1278_v0 }
  0x23   : > { %314 = vst [vmem:[#allocation2 + $0xe1] sm:$0xff] %v2089_v39  ;;  %315 = vst [vmem:[#allocation2 + $0xf1] sm:$0xff] %v2092_v40  ;;  %1832 = vmatpush3.msra.mxu0 %v1278_v0  ;;  %1918 = vmatpush3.msra.mxu1 %v1278_v0 }
  0x24   : > { %316 = vst [vmem:[#allocation2 + $0xf9] sm:$0xff] %v2099_v44  ;;  %301 = vst [vmem:[#allocation2 + $0x49] sm:$0xff] %v2105_v45  ;;  %1833 = vmatprep.subr.mxu0 %v1277_v27  ;;  %1903 = vmatprep.subr.mxu1 %v1277_v27 }
  0x25   : > { %302 = vst [vmem:[#allocation2 + $0x51] sm:$0xff] %v2108_v46  ;;  %317 = vst [vmem:[#allocation2 + $0x109] sm:$0xff] %v2121_v50  ;;  %1834 = vmatpush3.msra.mxu0 %v1277_v27  ;;  %1919 = vmatpush3.msra.mxu1 %v1277_v27  ;;  %v1274_v27 = vld [vmem:[%s3081_s3 + $0x10] sm:$0xff] }
  0x26   : > { %318 = vst [vmem:[#allocation2 + $0x111] sm:$0xff] %v2124_v51  ;;  %303 = vst [vmem:[#allocation2 + $0x61] sm:$0xff] %v2127_v52  ;;  %v2146_v60 = vld [vmem:[#allocation2 + $0x18] sm:$0xff]  ;;  %1835 = vmatprep.subr.mxu0 %v1276_v35  ;;  %1904 = vmatprep.subr.mxu1 %v1276_v35 }
  0x27   : > { %3112 = vst [vmem:[#allocation4_spill] sm:$0xff] %v2141_v58  ;;  %304 = vst [vmem:[#allocation2 + $0x69] sm:$0xff] %v2134_v56  ;;  %v636_v1 = vmul.f32 %v2069_v29, %v2146_v60  ;;  %v2165_v2 = vld [vmem:[#allocation2 + $0x1a] sm:$0xff]  ;;  %v2178_v8 = vld [vmem:[#allocation2 + $0x30] sm:$0xff]  ;;  %1836 = vmatpush3.msra.mxu0 %v1276_v35  ;;  %1920 = vmatpush3.msra.mxu1 %v1276_v35 }
  0x28   : > { %319 = vst [vmem:[#allocation2 + $0x121] sm:$0xff] %v2138_v57  ;;  %320 = vst [vmem:[#allocation2 + $0x129] sm:$0xff] %v2141_v58  ;;  %v2167_v3 = vld [vmem:[#allocation2 + $0x20] sm:$0xff]  ;;  %v836_v6 = vmul.f32 %v2071_v30, %v2165_v2  ;;  %v2180_v9 = vld [vmem:[#allocation2 + $0x32] sm:$0xff]  ;;  %v937_v19 = vmul.f32 %v2095_v42, %v2178_v8 }
  0x29   : > { %v637_v11 = vmul.f32 %v2069_v29, %v2167_v3  ;;  %3113 = vst [vmem:[#allocation5_spill] sm:$0xff] %v2185_v16  ;;  %v668_v17 = vadd.f32 %v636_v1, %v568_v53  ;;  %v2191_v22 = vmul.f32 %v2114_v48, %v2180_v9  ;;  %v2193_v23 = vld [vmem:[#allocation2 + $0x22] sm:$0xff]  ;;  %305 = vst [vmem:[#allocation2 + $0x79] sm:$0xff] %v2185_v16  ;;  %v2201_v32 = vld [vmem:[#allocation2 + $0x38] sm:$0xff] }
  0x2a   : > { %v348_v24 = vld [vmem:[#allocation2 + $0xc0] sm:$0xff]  ;;  %v837_v31 = vmul.f32 %v2071_v30, %v2193_v23  ;;  %v2204_v34 = vld [vmem:[#allocation2 + $0xd8] sm:$0xff]  ;;  %v938_v43 = vmul.f32 %v2095_v42, %v2201_v32  ;;  %v349_v54 = vld [vmem:[#allocation2 + $0xc8] sm:$0xff] }
  0x2b   : > { %v516_v25 = vld [vmem:[#allocation2 + $0xc2] sm:$0xff]  ;;  %v669_v28 = vadd.f32 %v637_v11, %v569_v10  ;;  %v384_v33 = vmul.f32 %v2042_v15, %v348_v24  ;;  %v768_v41 = vadd.f32 %v2081_v36, %v668_v17  ;;  %v2212_v49 = vld [vmem:[#allocation2 + $0x3a] sm:$0xff]  ;;  %v652_v10 = vmul.f32 %v2069_v29, %v2204_v34  ;;  %v517_v24 = vld [vmem:[#allocation2 + $0xca] sm:$0xff] }
  0x2c   : > { %v552_v53 = vmul.f32 %v2065_v26, %v516_v25  ;;  %v2217_v11 = vld [vmem:[#allocation2 + $0xda] sm:$0xff]  ;;  %v1138_v17 = vmul.f32 %v2114_v48, %v2212_v49 }
  0x2d   : > { %v769_v59 = vadd.f32 %v737_v55, %v669_v28  ;;  %v484_v1 = vadd.f32 %v452_v62, %v384_v33  ;;  %v2219_v7 = vld [vmem:[#allocation2 + $0xe0] sm:$0xff]  ;;  %v868_v36 = vadd.f32 %v836_v6, %v768_v41  ;;  %v852_v25 = vmul.f32 %v2071_v30, %v2217_v11  ;;  %v1275_v55 = vld [vmem:[%s3081_s3 + $0x18] sm:$0xff] }
  0x2e   : > { %v385_v28 = vmul.f32 %v2042_v15, %v349_v54  ;;  %v553_v6 = vmul.f32 %v2065_v26, %v517_v24  ;;  %v653_v41 = vmul.f32 %v2069_v29, %v2219_v7  ;;  %1837 = vmatprep.subr.mxu0 %v1275_v55  ;;  %1905 = vmatprep.subr.mxu1 %v1275_v55  ;;  %v2245_v35 = vld [vmem:[%s3080_s2] ss:$0 sm:$0xff] }
  0x2f   : > { %v869_v62 = vadd.f32 %v837_v31, %v769_v59  ;;  %v584_v0 = vadd.f32 %v552_v53, %v484_v1  ;;  %v969_v33 = vadd.f32 %v937_v19, %v868_v36  ;;  %v2235_v31 = vld [vmem:[#allocation2 + $0xf0] sm:$0xff]  ;;  %v1273_v19 = vld [vmem:[%s3081_s3 + $0x8] sm:$0xff]  ;;  %1838 = vmatpush3.msra.mxu0 %v1275_v55  ;;  %1921 = vmatpush3.msra.mxu1 %v1275_v55 }
  0x30   : > { %v485_v53 = vadd.f32 %v2174_v5, %v385_v28  ;;  %v2249_v59 = vld [vmem:[#allocation2 + $0xf2] sm:$0xff]  ;;  %v753_v5 = vmul.f32 %v2058_v21, %v2089_v39  ;;  %v2258_v36 = vld [vmem:[#allocation2 + $0xe2] sm:$0xff]  ;;  %1839 = vmatprep.subr.mxu0 %v1274_v27  ;;  %1906 = vmatprep.subr.mxu1 %v1274_v27 }
  0x31   : > { %v970_v16 = vadd.f32 %v938_v43, %v869_v62  ;;  %v684_v58 = vadd.f32 %v652_v10, %v584_v0  ;;  %v1069_v54 = vadd.f32 %v2112_v47, %v969_v33  ;;  %v953_v43 = vmul.f32 %v2095_v42, %v2235_v31  ;;  %v1272_v47 = vld [vmem:[%s3081_s3] sm:$0xff]  ;;  %v2260_v62 = vld [vmem:[#allocation2 + $0xf8] sm:$0xff]  ;;  %v2263_v0 = vld [vmem:[%s2024_s9 + $0x48] sm:$0xff]  ;;  %1840 = vmatpush3.msra.mxu0 %v1274_v27 }
  0x32   : > { %v585_v24 = vadd.f32 %v553_v6, %v485_v53  ;;  %3114 = vst [vmem:[#allocation6_spill] sm:$0xff] %v2263_v0  ;;  %v1153_v28 = vmul.f32 %v2114_v48, %v2249_v59  ;;  %306 = vst [vmem:[#allocation2 + $0x81] sm:$0xff] %v2263_v0  ;;  %1922 = vmatpush3.msra.mxu1 %v1274_v27  ;;  %v2283_v53 = vld [vmem:[%s2024_s9 + $0x58] sm:$0xff]  ;;  %1841 = vmatprep.subr.mxu0 %v1273_v19  ;;  %v2301_v27 = vld [vmem:[%s2024_s9 + $0x60] sm:$0xff] }
  0x33   : > { %v1070_v1 = vadd.f32 %v2150_v61, %v970_v16  ;;  %v784_v10 = vadd.f32 %v2155_v63, %v684_v58  ;;  %v1169_v55 = vadd.f32 %v2191_v22, %v1069_v54  ;;  %v853_v58 = vmul.f32 %v2071_v30, %v2258_v36  ;;  %v2272_v61 = vld [vmem:[%s2024_s9 + $0xc0] sm:$0xff]  ;;  %v2275_v63 = vld [vmem:[%s2024_s9 + $0xc8] sm:$0xff]  ;;  %v2278_v16 = vld [vmem:[%s2024_s9 + $0x50] sm:$0xff]  ;;  %3117 = vst [vmem:[#allocation9_spill] sm:$0xff] %v2283_v53 }
  0x34   : > { %3115 = vst [vmem:[#allocation7_spill] sm:$0xff] %v2275_v63  ;;  %3116 = vst [vmem:[#allocation8_spill] sm:$0xff] %v2278_v16  ;;  %v685_v6 = vadd.f32 %v653_v41, %v585_v24  ;;  %v2287_v54 = vld [vmem:[%s2024_s9 + $0xd0] sm:$0xff]  ;;  %v2290_v0 = vld [vmem:[%s2024_s9 + $0xd8] sm:$0xff]  ;;  %1907 = vmatprep.subr.mxu1 %v1273_v19  ;;  %v370_v41 = vmul.f32 %v2146_v60, %v2042_v15  ;;  %1842 = vmatpush3.msra.mxu0 %v1273_v19 }
  0x35   : > { %v1170_v33 = vadd.f32 %v1138_v17, %v1070_v1  ;;  %v884_v22 = vadd.f32 %v852_v25, %v784_v10  ;;  %321 = vst [vmem:[#allocation2 + $0x139] sm:$0xff] %v2272_v61  ;;  %322 = vst [vmem:[#allocation2 + $0x141] sm:$0xff] %v2275_v63  ;;  %v1208_v17 = vadd.f32 %v2245_v35, %v1169_v55  ;;  %v2304_v1 = vld [vmem:[%s2024_s9 + $0x68] sm:$0xff]  ;;  %v2307_v10 = vld [vmem:[%s2024_s9 + $0xe0] sm:$0xff]  ;;  %1923 = vmatpush3.msra.mxu1 %v1273_v19 }
  0x36   : > { %307 = vst [vmem:[#allocation2 + $0x91] sm:$0xff] %v2278_v16  ;;  %3118 = vst [vmem:[#allocation10_spill] sm:$0xff] %v2287_v54  ;;  %v954_v25 = vmul.f32 %v2095_v42, %v2260_v62  ;;  %v785_v16 = vadd.f32 %v753_v5, %v685_v6  ;;  %v2313_v60 = vld [vmem:[%s2024_s9 + $0xe8] sm:$0xff]  ;;  %1843 = vmatprep.subr.mxu0 %v1272_v47  ;;  %1908 = vmatprep.subr.mxu1 %v1272_v47 }
  0x37   : > { %3119 = vst [vmem:[#allocation11_spill] sm:$0xff] %v2290_v0  ;;  %308 = vst [vmem:[#allocation2 + $0x99] sm:$0xff] %v2283_v53  ;;  %v1209_v24 = vadd.f32 %v2245_v35, %v1170_v33  ;;  %v985_v55 = vadd.f32 %v953_v43, %v884_v22  ;;  %v438_v19 = vmul.f32 %v2056_v20, %v2033_v12  ;;  %1844 = vmatpush3.msra.mxu0 %v1272_v47 }
  0x38   : > { %323 = vst [vmem:[#allocation2 + $0x151] sm:$0xff] %v2287_v54  ;;  %324 = vst [vmem:[#allocation2 + $0x159] sm:$0xff] %v2290_v0  ;;  %v1240_v0 = vmax.f32 %v1208_v17, 0.0  ;;  %v538_v43 = vmul.f32 %v2165_v2, %v2065_v26  ;;  %1924 = vmatpush3.msra.mxu1 %v1272_v47  ;;  %v885_v22 = vadd.f32 %v853_v58, %v785_v16  ;;  %v2327_v17 = vld [vmem:[%s2024_s9 + $0xf0] sm:$0xff] }
  0x39   : > { %3120 = vst [vmem:[#allocation12_spill] sm:$0xff] %v2301_v27  ;;  %3121 = vst [vmem:[#allocation13_spill] sm:$0xff] %v2304_v1  ;;  %v1241_v5 = vmax.f32 %v1209_v24, 0.0  ;;  %v1085_v33 = vadd.f32 %v2171_v4, %v985_v55  ;;  %v1054_v6 = vmul.f32 %v2083_v37, %v2099_v44  ;;  %v470_v2 = vadd.f32 %v438_v19, %v370_v41  ;;  %v2341_v41 = vld [vmem:[#allocation2 + $0x48] sm:$0xff] }
  0x3a   : > { %3122 = vst [vmem:[#allocation14_spill] sm:$0xff] %v2307_v10  ;;  %309 = vst [vmem:[#allocation2 + $0xa9] sm:$0xff] %v2301_v27  ;;  %1845 = vmatprep.mubr.f32.mxu0 %v1240_v0  ;;  %v638_v24 = vmul.f32 %v2178_v8, %v2069_v29  ;;  %v986_v47 = vadd.f32 %v954_v25, %v885_v22  ;;  %v738_v58 = vmul.f32 %v2058_v21, %v2039_v14  ;;  %v2362_v27 = vld [vmem:[#allocation2 + $0x50] sm:$0xff] }
  0x3b   : > { %310 = vst [vmem:[#allocation2 + $0xb1] sm:$0xff] %v2304_v1  ;;  %3123 = vst [vmem:[#allocation15_spill] sm:$0xff] %v2313_v60  ;;  %v296_v1 = vld [vmem:[%s2024_s9 + $0xf8] sm:$0xff]  ;;  %1846 = vmatmul.mubr.f32.vlgmr.msra.gmra.mxu0 %v1241_v5  ;;  %v1185_v4 = vadd.f32 %v1153_v28, %v1085_v33  ;;  %v371_v16 = vmul.f32 %v2167_v3, %v2042_v15  ;;  %v570_v0 = vadd.f32 %v538_v43, %v470_v2  ;;  %v2352_v43 = vld [vmem:[#allocation2 + $0x4a] sm:$0xff] }
  0x3c   : > { %325 = vst [vmem:[#allocation2 + $0x169] sm:$0xff] %v2307_v10  ;;  %326 = vst [vmem:[#allocation2 + $0x171] sm:$0xff] %v2313_v60  ;;  %v2324_v10 = vld [vmem:[#allocation2 + $0xfa] sm:$0xff]  ;;  %v838_v55 = vmul.f32 %v2180_v9, %v2071_v30  ;;  %v439_v19 = vmul.f32 %v2056_v20, %v2036_v13  ;;  %v1086_v25 = vadd.f32 %v1054_v6, %v986_v47 }
  0x3d   : > { %3124 = vst [vmem:[#allocation16_spill] sm:$0xff] %v2327_v17  ;;  %v1154_v12 = vmul.f32 %v2114_v48, %v2324_v10  ;;  %327 = vst [vmem:[#allocation2 + $0x181] sm:$0xff] %v2327_v17  ;;  %v1224_v28 = vadd.f32 %v2245_v35, %v1185_v4  ;;  %v939_v5 = vmul.f32 %v2095_v42, %v2341_v41 }
  0x3e   : > { %328 = vst [vmem:[#allocation2 + $0x189] sm:$0xff] %v296_v1  ;;  %v539_v1 = vmul.f32 %v2193_v23, %v2065_v26  ;;  %v1039_v3 = vmul.f32 %v2083_v37, %v2105_v45  ;;  %v670_v33 = vadd.f32 %v638_v24, %v570_v0  ;;  %v1139_v22 = vmul.f32 %v2114_v48, %v2352_v43 }
  0x3f   : > { %v471_v2 = vadd.f32 %v439_v19, %v371_v16  ;;  %v639_v13 = vmul.f32 %v2201_v32, %v2069_v29  ;;  %v1256_v23 = vmax.f32 %v1224_v28, 0.0  ;;  %v1186_v17 = vadd.f32 %v1154_v12, %v1086_v25  ;;  %v2375_v28 = vld [vmem:[#allocation2 + $0x52] sm:$0xff] }
  0x40   : > { %v739_v6 = vmul.f32 %v2058_v21, %v2048_v18  ;;  %v386_v4 = vmul.f32 %v2204_v34, %v2042_v15  ;;  %v770_v47 = vadd.f32 %v738_v58, %v670_v33  ;;  %v454_v24 = vmul.f32 %v2056_v20, %v2086_v38 }
  0x41   : > { %v571_v60 = vadd.f32 %v539_v1, %v471_v2  ;;  %v554_v16 = vmul.f32 %v2217_v11, %v2065_v26  ;;  %1869 = vmatprep.mubr.f32.mxu1 %v1256_v23  ;;  %v1225_v0 = vadd.f32 %v2245_v35, %v1186_v17  ;;  %v839_v12 = vmul.f32 %v2212_v49, %v2071_v30 }
  0x42   : > { %v940_v19 = vmul.f32 %v2095_v42, %v2362_v27  ;;  %v1040_v34 = vmul.f32 %v2083_v37, %v2108_v46  ;;  %v870_v58 = vadd.f32 %v838_v55, %v770_v47  ;;  %v486_v38 = vadd.f32 %v454_v24, %v386_v4 }
  0x43   : > { %v671_v1 = vadd.f32 %v639_v13, %v571_v60  ;;  %v654_v11 = vmul.f32 %v2235_v31, %v2069_v29  ;;  %v1257_v25 = vmax.f32 %v1225_v0, 0.0  ;;  %v1140_v17 = vmul.f32 %v2114_v48, %v2375_v28  ;;  %v2385_v60 = vld [vmem:[#allocation2 + $0x108] sm:$0xff] }
  0x44   : > { %v754_v33 = vmul.f32 %v2058_v21, %v2092_v40  ;;  %v387_v2 = vmul.f32 %v2219_v7, %v2042_v15  ;;  %v971_v23 = vadd.f32 %v939_v5, %v870_v58  ;;  %v586_v55 = vadd.f32 %v554_v16, %v486_v38  ;;  %v2397_v0 = vld [vmem:[#allocation2 + $0x10a] sm:$0xff] }
  0x45   : > { %v771_v54 = vadd.f32 %v739_v6, %v671_v1  ;;  %v455_v13 = vmul.f32 %v2056_v20, %v2089_v39  ;;  %1870 = vmatmul.mubr.f32.vlgmr.msra.gmra.mxu1 %v1257_v25  ;;  %v854_v4 = vmul.f32 %v2249_v59, %v2071_v30  ;;  %v955_v47 = vmul.f32 %v2095_v42, %v2385_v60 }
  0x46   : > { %v555_v24 = vmul.f32 %v2258_v36, %v2065_v26  ;;  %v655_v7 = vmul.f32 %v2260_v62, %v2069_v29  ;;  %v1071_v5 = vadd.f32 %v1039_v3, %v971_v23  ;;  %v686_v16 = vadd.f32 %v654_v11, %v586_v55 }
  0x47   : > { %v871_v6 = vadd.f32 %v839_v12, %v771_v54  ;;  %v487_v58 = vadd.f32 %v455_v13, %v387_v2  ;;  %v1055_v39 = vmul.f32 %v2083_v37, %v2121_v50  ;;  %v1155_v1 = vmul.f32 %v2114_v48, %v2397_v0  ;;  %v2407_v12 = vld [vmem:[#allocation2 + $0x110] sm:$0xff] }
  0x48   : > { %v755_v38 = vmul.f32 %v2058_v21, %v2099_v44  ;;  %v372_v36 = vmul.f32 %v2178_v8, %v2042_v15  ;;  %v1171_v25 = vadd.f32 %v1139_v22, %v1071_v5  ;;  %v786_v3 = vadd.f32 %v754_v33, %v686_v16  ;;  %v2418_v13 = vld [vmem:[#allocation2 + $0x112] sm:$0xff] }
  0x49   : > { %v972_v53 = vadd.f32 %v940_v19, %v871_v6  ;;  %v587_v54 = vadd.f32 %v555_v24, %v487_v58  ;;  %v855_v11 = vmul.f32 %v2324_v10, %v2071_v30  ;;  %v956_v2 = vmul.f32 %v2095_v42, %v2407_v12 }
  0x4a   : > { %v440_v23 = vmul.f32 %v2056_v20, %v2039_v14  ;;  %v540_v55 = vmul.f32 %v2180_v9, %v2065_v26  ;;  %v1210_v8 = vadd.f32 %v2245_v35, %v1171_v25  ;;  %v886_v19 = vadd.f32 %v854_v4, %v786_v3 }
  0x4b   : > { %v1072_v22 = vadd.f32 %v1040_v34, %v972_v53  ;;  %v687_v33 = vadd.f32 %v655_v7, %v587_v54  ;;  %v1056_v24 = vmul.f32 %v2083_v37, %v2124_v51  ;;  %v1156_v5 = vmul.f32 %v2114_v48, %v2418_v13  ;;  %v2437_v54 = vld [vmem:[#allocation2 + $0x60] sm:$0xff] }
  0x4c   : > { %v472_v6 = vadd.f32 %v440_v23, %v372_v36  ;;  %v640_v14 = vmul.f32 %v2341_v41, %v2069_v29  ;;  %v1242_v16 = vmax.f32 %v1210_v8, 0.0  ;;  %v987_v9 = vadd.f32 %v955_v47, %v886_v19 }
  0x4d   : > { %v1172_v58 = vadd.f32 %v1140_v17, %v1072_v22  ;;  %v787_v63 = vadd.f32 %v755_v38, %v687_v33  ;;  %v740_v53 = vmul.f32 %v2058_v21, %v2105_v45  ;;  %v373_v34 = vmul.f32 %v2201_v32, %v2042_v15 }
  0x4e   : > { %v572_v25 = vadd.f32 %v540_v55, %v472_v6  ;;  %v441_v4 = vmul.f32 %v2056_v20, %v2048_v18  ;;  %1848 = vmatprep.mubr.f32.mxu0 %v1242_v16  ;;  %v1087_v36 = vadd.f32 %v1055_v39, %v987_v9  ;;  %v541_v17 = vmul.f32 %v2212_v49, %v2065_v26 }
  0x4f   : > { %v1211_v7 = vadd.f32 %v2245_v35, %v1172_v58  ;;  %v887_v3 = vadd.f32 %v855_v11, %v787_v63  ;;  %v840_v38 = vmul.f32 %v2352_v43, %v2071_v30  ;;  %v641_v32 = vmul.f32 %v2362_v27, %v2069_v29  ;;  %v2454_v58 = vld [vmem:[#allocation2 + $0x68] sm:$0xff] }
  0x50   : > { %v672_v47 = vadd.f32 %v640_v14, %v572_v25  ;;  %v473_v23 = vadd.f32 %v441_v4, %v373_v34  ;;  %v1187_v18 = vadd.f32 %v1155_v1, %v1087_v36  ;;  %v941_v39 = vmul.f32 %v2095_v42, %v2437_v54  ;;  %v2452_v14 = vld [vmem:[#allocation2 + $0x62] sm:$0xff]  ;;  %v2464_v36 = vld [vmem:[#allocation2 + $0x6a] sm:$0xff] }
  0x51   : > { %v1243_v55 = vmax.f32 %v1211_v7, 0.0  ;;  %v988_v8 = vadd.f32 %v956_v2, %v887_v3  ;;  %v1041_v49 = vmul.f32 %v2083_v37, %v2127_v52  ;;  %v741_v22 = vmul.f32 %v2058_v21, %v2108_v46 }
  0x52   : > { %v772_v63 = vadd.f32 %v740_v53, %v672_v47  ;;  %v573_v11 = vadd.f32 %v541_v17, %v473_v23  ;;  %v1226_v19 = vadd.f32 %v2245_v35, %v1187_v18  ;;  %v841_v6 = vmul.f32 %v2375_v28, %v2071_v30 }
  0x53   : > { %1849 = vmatmul.mubr.f32.gmra.mxu0 %v1243_v55  ;;  %v1088_v33 = vadd.f32 %v1056_v24, %v988_v8  ;;  %v388_v1 = vmul.f32 %v2235_v31, %v2042_v15  ;;  %v456_v9 = vmul.f32 %v2056_v20, %v2092_v40  ;;  %v556_v25 = vmul.f32 %v2249_v59, %v2065_v26 }
  0x54   : > { %v872_v2 = vadd.f32 %v840_v38, %v772_v63  ;;  %v673_v16 = vadd.f32 %v641_v32, %v573_v11  ;;  %v1258_v53 = vmax.f32 %v1226_v19, 0.0  ;;  %v1141_v34 = vmul.f32 %v2114_v48, %v2452_v14 }
  0x55   : > { %v1188_v24 = vadd.f32 %v1156_v5, %v1088_v33  ;;  %v942_v31 = vmul.f32 %v2095_v42, %v2454_v58  ;;  %v488_v3 = vadd.f32 %v456_v9, %v388_v1  ;;  %v656_v17 = vmul.f32 %v2385_v60, %v2069_v29 }
  0x56   : > { %v973_v4 = vadd.f32 %v941_v39, %v872_v2  ;;  %v773_v7 = vadd.f32 %v741_v22, %v673_v16  ;;  %1872 = vmatprep.mubr.f32.mxu1 %v1258_v53  ;;  %v1042_v59 = vmul.f32 %v2083_v37, %v2134_v56  ;;  %v1142_v5 = vmul.f32 %v2114_v48, %v2464_v36  ;;  %v2479_v39 = vld [vmem:[#allocation2 + $0x120] sm:$0xff] }
  0x57   : > { %v1227_v40 = vadd.f32 %v2245_v35, %v1188_v24  ;;  %v756_v47 = vmul.f32 %v2058_v21, %v2121_v50  ;;  %v588_v32 = vadd.f32 %v556_v25, %v488_v3  ;;  %v389_v55 = vmul.f32 %v2260_v62, %v2042_v15 }
  0x58   : > { %v1073_v38 = vadd.f32 %v1041_v49, %v973_v4  ;;  %v873_v23 = vadd.f32 %v841_v6, %v773_v7  ;;  %v856_v8 = vmul.f32 %v2397_v0, %v2071_v30  ;;  %v457_v63 = vmul.f32 %v2056_v20, %v2099_v44  ;;  %v2487_v6 = vld [vmem:[#allocation2 + $0x122] sm:$0xff] }
  0x59   : > { %v1259_v18 = vmax.f32 %v1227_v40, 0.0  ;;  %v557_v11 = vmul.f32 %v2324_v10, %v2065_v26  ;;  %v688_v49 = vadd.f32 %v656_v17, %v588_v32  ;;  %v957_v33 = vmul.f32 %v2095_v42, %v2479_v39  ;;  %v2506_v40 = vld [vmem:[#allocation2 + $0x128] sm:$0xff] }
  0x5a   : > { %v1173_v22 = vadd.f32 %v1141_v34, %v1073_v38  ;;  %v974_v19 = vadd.f32 %v942_v31, %v873_v23  ;;  %v1057_v62 = vmul.f32 %v2083_v37, %v2138_v57  ;;  %v1157_v1 = vmul.f32 %v2114_v48, %v2487_v6  ;;  %v2510_v38 = vld [vmem:[#allocation2 + $0x12a] sm:$0xff]  ;;  %v3125_v23 = vld [vmem:[#allocation4_spill] sm:$0xff] }
  0x5b   : > { %1873 = vmatmul.mubr.f32.gmra.mxu1 %v1259_v18  ;;  %v489_v2 = vadd.f32 %v457_v63, %v389_v55  ;;  %v657_v44 = vmul.f32 %v2407_v12, %v2069_v29  ;;  %v788_v9 = vadd.f32 %v756_v47, %v688_v49  ;;  %v757_v25 = vmul.f32 %v2058_v21, %v2124_v51  ;;  %v2523_v49 = vld [vmem:[#allocation2 + $0x78] sm:$0xff] }
  0x5c   : > { %v1212_v10 = vadd.f32 %v2245_v35, %v1173_v22  ;;  %v1074_v16 = vadd.f32 %v1042_v59, %v974_v19  ;;  %v374_v24 = vmul.f32 %v2341_v41, %v2042_v15  ;;  %v442_v34 = vmul.f32 %v2056_v20, %v2105_v45 }
  0x5d   : > { %v589_v53 = vadd.f32 %v557_v11, %v489_v2  ;;  %v542_v31 = vmul.f32 %v2352_v43, %v2065_v26  ;;  %v888_v3 = vadd.f32 %v856_v8, %v788_v9  ;;  %v857_v17 = vmul.f32 %v2418_v13, %v2071_v30 }
  0x5e   : > { %v1244_v4 = vmax.f32 %v1212_v10, 0.0  ;;  %v1174_v7 = vadd.f32 %v1142_v5, %v1074_v16  ;;  %v958_v47 = vmul.f32 %v2095_v42, %v2506_v40  ;;  %v474_v41 = vadd.f32 %v442_v34, %v374_v24 }
  0x5f   : > { %v689_v59 = vadd.f32 %v657_v44, %v589_v53  ;;  %v642_v45 = vmul.f32 %v2437_v54, %v2069_v29  ;;  %v989_v5 = vadd.f32 %v957_v33, %v888_v3  ;;  %v1058_v32 = vmul.f32 %v2083_v37, %v3125_v23  ;;  %v2535_v53 = vld [vmem:[#allocation2 + $0x7a] sm:$0xff] }
  0x60   : > { %1851 = vmatprep.mubr.f32.mxu0 %v1244_v4  ;;  %v1213_v43 = vadd.f32 %v2245_v35, %v1174_v7  ;;  %v1158_v55 = vmul.f32 %v2114_v48, %v2510_v38  ;;  %v574_v8 = vadd.f32 %v542_v31, %v474_v41  ;;  %v742_v63 = vmul.f32 %v2058_v21, %v2127_v52 }
  0x61   : > { %v789_v18 = vadd.f32 %v757_v25, %v689_v59  ;;  %v375_v11 = vmul.f32 %v2362_v27, %v2042_v15  ;;  %v1089_v19 = vadd.f32 %v1057_v62, %v989_v5  ;;  %v443_v33 = vmul.f32 %v2056_v20, %v2108_v46  ;;  %v3126_v25 = vld [vmem:[#allocation5_spill] sm:$0xff] }
  0x62   : > { %v1245_v22 = vmax.f32 %v1213_v43, 0.0  ;;  %v543_v2 = vmul.f32 %v2375_v28, %v2065_v26  ;;  %v674_v10 = vadd.f32 %v642_v45, %v574_v8  ;;  %v842_v16 = vmul.f32 %v2452_v14, %v2071_v30 }
  0x63   : > { %v889_v44 = vadd.f32 %v857_v17, %v789_v18  ;;  %v943_v9 = vmul.f32 %v2095_v42, %v2523_v49  ;;  %v1189_v27 = vadd.f32 %v1157_v1, %v1089_v19  ;;  %v1043_v62 = vmul.f32 %v2083_v37, %v3126_v25  ;;  %v2552_v18 = vld [vmem:[#allocation2 + $0x80] sm:$0xff] }
  0x64   : > { %1852 = vmatmul.mubr.f32.gmra.mxu0 %v1245_v22  ;;  %v475_v24 = vadd.f32 %v443_v33, %v375_v11  ;;  %v643_v46 = vmul.f32 %v2454_v58, %v2069_v29  ;;  %v774_v34 = vadd.f32 %v742_v63, %v674_v10  ;;  %v1143_v31 = vmul.f32 %v2114_v48, %v2535_v53  ;;  %v2560_v19 = vld [vmem:[#allocation2 + $0x82] sm:$0xff] }
  0x65   : > { %v990_v28 = vadd.f32 %v958_v47, %v889_v44  ;;  %v743_v4 = vmul.f32 %v2058_v21, %v2134_v56  ;;  %v1228_v7 = vadd.f32 %v2245_v35, %v1189_v27  ;;  %v390_v3 = vmul.f32 %v2385_v60, %v2042_v15 }
  0x66   : > { %v575_v1 = vadd.f32 %v543_v2, %v475_v24  ;;  %v458_v17 = vmul.f32 %v2056_v20, %v2121_v50  ;;  %v874_v41 = vadd.f32 %v842_v16, %v774_v34  ;;  %v843_v47 = vmul.f32 %v2464_v36, %v2071_v30 }
  0x67   : > { %v1090_v59 = vadd.f32 %v1058_v32, %v990_v28  ;;  %v558_v45 = vmul.f32 %v2397_v0, %v2065_v26  ;;  %v1260_v43 = vmax.f32 %v1228_v7, 0.0  ;;  %v658_v63 = vmul.f32 %v2479_v39, %v2069_v29  ;;  %v3127_v32 = vld [vmem:[#allocation6_spill] sm:$0xff]  ;;  %v2575_v7 = vld [vmem:[#allocation2 + $0x138] sm:$0xff] }
  0x68   : > { %v675_v5 = vadd.f32 %v643_v46, %v575_v1  ;;  %v490_v8 = vadd.f32 %v458_v17, %v390_v3  ;;  %v975_v11 = vadd.f32 %v943_v9, %v874_v41  ;;  %v944_v50 = vmul.f32 %v2095_v42, %v2552_v18 }
  0x69   : > { %v1190_v60 = vadd.f32 %v1158_v55, %v1090_v59  ;;  %v1044_v22 = vmul.f32 %v2083_v37, %v3127_v32  ;;  %1875 = vmatprep.mubr.f32.mxu1 %v1260_v43  ;;  %v1144_v33 = vmul.f32 %v2114_v48, %v2560_v19  ;;  %v758_v44 = vmul.f32 %v2058_v21, %v2138_v57  ;;  %v2583_v59 = vld [vmem:[#allocation2 + $0x13a] sm:$0xff] }
  0x6a   : > { %v775_v0 = vadd.f32 %v743_v4, %v675_v5  ;;  %v590_v2 = vadd.f32 %v558_v45, %v490_v8  ;;  %v1075_v10 = vadd.f32 %v1043_v62, %v975_v11  ;;  %v391_v16 = vmul.f32 %v2407_v12, %v2042_v15 }
  0x6b   : > { %v1229_v55 = vadd.f32 %v2245_v35, %v1190_v60  ;;  %v459_v9 = vmul.f32 %v2056_v20, %v2124_v51  ;;  %v858_v46 = vmul.f32 %v2487_v6, %v2071_v30  ;;  %v559_v28 = vmul.f32 %v2418_v13, %v2065_v26 }
  0x6c   : > { %v875_v27 = vadd.f32 %v843_v47, %v775_v0  ;;  %v690_v24 = vadd.f32 %v658_v63, %v590_v2  ;;  %v1175_v4 = vadd.f32 %v1143_v31, %v1075_v10  ;;  %v659_v62 = vmul.f32 %v2506_v40, %v2069_v29  ;;  %v3128_v10 = vld [vmem:[#allocation7_spill] sm:$0xff] }
  0x6d   : > { %v1261_v34 = vmax.f32 %v1229_v55, 0.0  ;;  %v491_v1 = vadd.f32 %v459_v9, %v391_v16  ;;  %v959_v51 = vmul.f32 %v2095_v42, %v2575_v7  ;;  %v1059_v17 = vmul.f32 %v2083_v37, %v2272_v61 }
  0x6e   : > { %v976_v12 = vadd.f32 %v944_v50, %v875_v27  ;;  %v790_v3 = vadd.f32 %v758_v44, %v690_v24  ;;  %v1214_v13 = vadd.f32 %v2245_v35, %v1175_v4  ;;  %v1159_v31 = vmul.f32 %v2114_v48, %v2583_v59  ;;  %v2598_v44 = vld [vmem:[#allocation2 + $0x140] sm:$0xff] }
  0x6f   : > { %1876 = vmatmul.mubr.f32.gmra.mxu1 %v1261_v34  ;;  %v591_v41 = vadd.f32 %v559_v28, %v491_v1  ;;  %v759_v47 = vmul.f32 %v2058_v21, %v3125_v23  ;;  %v376_v5 = vmul.f32 %v2437_v54, %v2042_v15  ;;  %v444_v8 = vmul.f32 %v2056_v20, %v2127_v52 }
  0x70   : > { %v1076_v45 = vadd.f32 %v1044_v22, %v976_v12  ;;  %v890_v43 = vadd.f32 %v858_v46, %v790_v3  ;;  %v1246_v63 = vmax.f32 %v1214_v13, 0.0  ;;  %v859_v11 = vmul.f32 %v2510_v38, %v2071_v30  ;;  %v2621_v13 = vld [vmem:[#allocation2 + $0x90] sm:$0xff] }
  0x71   : > { %v691_v60 = vadd.f32 %v659_v62, %v591_v41  ;;  %v544_v50 = vmul.f32 %v2452_v14, %v2065_v26  ;;  %v476_v22 = vadd.f32 %v444_v8, %v376_v5  ;;  %v644_v55 = vmul.f32 %v2523_v49, %v2069_v29  ;;  %v2615_v62 = vld [vmem:[#allocation2 + $0x142] sm:$0xff] }
  0x72   : > { %v1176_v0 = vadd.f32 %v1144_v33, %v1076_v45  ;;  %v991_v2 = vadd.f32 %v959_v51, %v890_v43  ;;  %1854 = vmatprep.mubr.f32.mxu0 %v1246_v63  ;;  %v960_v52 = vmul.f32 %v2095_v42, %v2598_v44  ;;  %v1060_v16 = vmul.f32 %v2083_v37, %v3128_v10 }
  0x73   : > { %v791_v54 = vadd.f32 %v759_v47, %v691_v60  ;;  %v576_v14 = vadd.f32 %v544_v50, %v476_v22  ;;  %v744_v33 = vmul.f32 %v2058_v21, %v3126_v25  ;;  %v377_v46 = vmul.f32 %v2454_v58, %v2042_v15  ;;  %v3129_v47 = vld [vmem:[#allocation8_spill] sm:$0xff] }
  0x74   : > { %v1215_v9 = vadd.f32 %v2245_v35, %v1176_v0  ;;  %v1091_v27 = vadd.f32 %v1059_v17, %v991_v2  ;;  %v445_v28 = vmul.f32 %v2056_v20, %v2134_v56  ;;  %v545_v34 = vmul.f32 %v2464_v36, %v2065_v26  ;;  %v2634_v50 = vld [vmem:[#allocation2 + $0x92] sm:$0xff] }
  0x75   : > { %v891_v24 = vadd.f32 %v859_v11, %v791_v54  ;;  %v676_v12 = vadd.f32 %v644_v55, %v576_v14  ;;  %v844_v3 = vmul.f32 %v2535_v53, %v2071_v30  ;;  %v1160_v17 = vmul.f32 %v2114_v48, %v2615_v62 }
  0x76   : > { %v1247_v4 = vmax.f32 %v1215_v9, 0.0  ;;  %v1191_v1 = vadd.f32 %v1159_v31, %v1091_v27  ;;  %v477_v58 = vadd.f32 %v445_v28, %v377_v46  ;;  %v645_v56 = vmul.f32 %v2552_v18, %v2069_v29 }
  0x77   : > { %v992_v51 = vadd.f32 %v960_v52, %v891_v24  ;;  %v776_v31 = vadd.f32 %v744_v33, %v676_v12  ;;  %v945_v41 = vmul.f32 %v2095_v42, %v2621_v13  ;;  %v1045_v45 = vmul.f32 %v2083_v37, %v3129_v47  ;;  %v3130_v33 = vld [vmem:[#allocation9_spill] sm:$0xff] }
  0x78   : > { %1855 = vmatmul.mubr.f32.gmra.mxu0 %v1247_v4  ;;  %v1230_v36 = vadd.f32 %v2245_v35, %v1191_v1  ;;  %v577_v5 = vadd.f32 %v545_v34, %v477_v58  ;;  %v745_v8 = vmul.f32 %v2058_v21, %v3127_v32  ;;  %v392_v63 = vmul.f32 %v2479_v39, %v2042_v15 }
  0x79   : > { %v1092_v43 = vadd.f32 %v1060_v16, %v992_v51  ;;  %v876_v11 = vadd.f32 %v844_v3, %v776_v31  ;;  %v460_v0 = vmul.f32 %v2056_v20, %v2138_v57  ;;  %v560_v2 = vmul.f32 %v2487_v6, %v2065_v26  ;;  %v2644_v16 = vld [vmem:[#allocation2 + $0x98] sm:$0xff]  ;;  %v2665_v31 = vld [vmem:[#allocation2 + $0x150] sm:$0xff] }
  0x7a   : > { %v1262_v60 = vmax.f32 %v1230_v36, 0.0  ;;  %v1145_v55 = vmul.f32 %v2114_v48, %v2634_v50  ;;  %v677_v54 = vadd.f32 %v645_v56, %v577_v5  ;;  %v845_v52 = vmul.f32 %v2560_v19, %v2071_v30  ;;  %v2663_v56 = vld [vmem:[#allocation2 + $0x9a] sm:$0xff]  ;;  %v3131_v5 = vld [vmem:[#allocation10_spill] sm:$0xff] }
  0x7b   : > { %v1192_v22 = vadd.f32 %v1160_v17, %v1092_v43  ;;  %v977_v39 = vadd.f32 %v945_v41, %v876_v11  ;;  %v946_v9 = vmul.f32 %v2095_v42, %v2644_v16  ;;  %v492_v27 = vadd.f32 %v460_v0, %v392_v63 }
  0x7c   : > { %1878 = vmatprep.mubr.f32.mxu1 %v1262_v60  ;;  %v660_v57 = vmul.f32 %v2575_v7, %v2069_v29  ;;  %v777_v14 = vadd.f32 %v745_v8, %v677_v54  ;;  %v1046_v24 = vmul.f32 %v2083_v37, %v3130_v33  ;;  %v760_v46 = vmul.f32 %v2058_v21, %v2272_v61 }
  0x7d   : > { %v1231_v6 = vadd.f32 %v2245_v35, %v1192_v22  ;;  %v1077_v28 = vadd.f32 %v1045_v45, %v977_v39  ;;  %v592_v34 = vadd.f32 %v560_v2, %v492_v27  ;;  %v393_v4 = vmul.f32 %v2506_v40, %v2042_v15  ;;  %v2684_v39 = vld [vmem:[#allocation2 + $0x152] sm:$0xff] }
  0x7e   : > { %v461_v1 = vmul.f32 %v2056_v20, %v3125_v23  ;;  %v877_v3 = vadd.f32 %v845_v52, %v777_v14  ;;  %v860_v51 = vmul.f32 %v2583_v59, %v2071_v30  ;;  %v561_v17 = vmul.f32 %v2510_v38, %v2065_v26  ;;  %v2690_v14 = vld [vmem:[#allocation2 + $0x158] sm:$0xff] }
  0x7f   : > { %v1263_v12 = vmax.f32 %v1231_v6, 0.0  ;;  %v1177_v58 = vadd.f32 %v1145_v55, %v1077_v28  ;;  %v692_v36 = vadd.f32 %v660_v57, %v592_v34  ;;  %v661_v40 = vmul.f32 %v2598_v44, %v2069_v29  ;;  %v3132_v28 = vld [vmem:[#allocation11_spill] sm:$0xff] }
  0x80   : > { %v493_v41 = vadd.f32 %v461_v1, %v393_v4  ;;  %v978_v23 = vadd.f32 %v946_v9, %v877_v3  ;;  %v1146_v45 = vmul.f32 %v2114_v48, %v2663_v56  ;;  %v961_v43 = vmul.f32 %v2095_v42, %v2665_v31 }
  0x81   : > { %1879 = vmatmul.mubr.f32.gmra.mxu1 %v1263_v12  ;;  %v1061_v38 = vmul.f32 %v2083_v37, %v3131_v5  ;;  %v1216_v8 = vadd.f32 %v2245_v35, %v1177_v58  ;;  %v792_v63 = vadd.f32 %v760_v46, %v692_v36  ;;  %v761_v11 = vmul.f32 %v2058_v21, %v3128_v10  ;;  %v2703_v58 = vld [vmem:[#allocation2 + $0x15a] sm:$0xff] }
  0x82   : > { %v593_v60 = vadd.f32 %v561_v17, %v493_v41  ;;  %v1078_v0 = vadd.f32 %v1046_v24, %v978_v23  ;;  %v378_v2 = vmul.f32 %v2523_v49, %v2042_v15  ;;  %v446_v22 = vmul.f32 %v2056_v20, %v3126_v25 }
  0x83   : > { %v546_v55 = vmul.f32 %v2535_v53, %v2065_v26  ;;  %v1248_v54 = vmax.f32 %v1216_v8, 0.0  ;;  %v892_v52 = vadd.f32 %v860_v51, %v792_v63  ;;  %v861_v27 = vmul.f32 %v2615_v62, %v2071_v30 }
  0x84   : > { %v693_v9 = vadd.f32 %v661_v40, %v593_v60  ;;  %v1178_v57 = vadd.f32 %v1146_v45, %v1078_v0  ;;  %v1161_v6 = vmul.f32 %v2114_v48, %v2684_v39  ;;  %v478_v49 = vadd.f32 %v446_v22, %v378_v2 }
  0x85   : > { %v646_v25 = vmul.f32 %v2621_v13, %v2069_v29  ;;  %1857 = vmatprep.mubr.f32.mxu0 %v1248_v54  ;;  %v993_v53 = vadd.f32 %v961_v43, %v892_v52  ;;  %v962_v46 = vmul.f32 %v2095_v42, %v2690_v14  ;;  %v1062_v34 = vmul.f32 %v2083_v37, %v3132_v28  ;;  %v2724_v54 = vld [vmem:[#allocation2 + $0xaa] sm:$0xff] }
  0x86   : > { %v793_v24 = vadd.f32 %v761_v11, %v693_v9  ;;  %v1217_v4 = vadd.f32 %v2245_v35, %v1178_v57  ;;  %v578_v1 = vadd.f32 %v546_v55, %v478_v49  ;;  %v746_v12 = vmul.f32 %v2058_v21, %v3129_v47  ;;  %v3133_v11 = vld [vmem:[#allocation12_spill] sm:$0xff] }
  0x87   : > { %v379_v3 = vmul.f32 %v2552_v18, %v2042_v15  ;;  %v1093_v51 = vadd.f32 %v1061_v38, %v993_v53  ;;  %v447_v36 = vmul.f32 %v2056_v20, %v3127_v32  ;;  %v547_v41 = vmul.f32 %v2560_v19, %v2065_v26  ;;  %v2713_v38 = vld [vmem:[#allocation2 + $0xa8] sm:$0xff] }
  0x88   : > { %v893_v17 = vadd.f32 %v861_v27, %v793_v24  ;;  %v1249_v40 = vmax.f32 %v1217_v4, 0.0  ;;  %v1162_v23 = vmul.f32 %v2114_v48, %v2703_v58  ;;  %v678_v45 = vadd.f32 %v646_v25, %v578_v1 }
  0x89   : > { %v846_v43 = vmul.f32 %v2634_v50, %v2071_v30  ;;  %v1193_v8 = vadd.f32 %v1161_v6, %v1093_v51  ;;  %v479_v63 = vadd.f32 %v447_v36, %v379_v3  ;;  %v647_v60 = vmul.f32 %v2644_v16, %v2069_v29  ;;  %v3134_v3 = vld [vmem:[#allocation13_spill] sm:$0xff] }
  0x8a   : > { %v994_v18 = vadd.f32 %v962_v46, %v893_v17  ;;  %1858 = vmatmul.mubr.f32.gmra.mxu0 %v1249_v40  ;;  %v778_v32 = vadd.f32 %v746_v12, %v678_v45  ;;  %v947_v19 = vmul.f32 %v2095_v42, %v2713_v38  ;;  %v1047_v0 = vmul.f32 %v2083_v37, %v3133_v11 }
  0x8b   : > { %v747_v2 = vmul.f32 %v2058_v21, %v3130_v33  ;;  %v1232_v22 = vadd.f32 %v2245_v35, %v1193_v8  ;;  %v579_v52 = vadd.f32 %v547_v41, %v479_v63  ;;  %v394_v9 = vmul.f32 %v2575_v7, %v2042_v15 }
  0x8c   : > { %v1094_v55 = vadd.f32 %v1062_v34, %v994_v18  ;;  %v878_v27 = vadd.f32 %v846_v43, %v778_v32  ;;  %v1147_v57 = vmul.f32 %v2114_v48, %v2724_v54  ;;  %v462_v6 = vmul.f32 %v2056_v20, %v2272_v61  ;;  %v2736_v34 = vld [vmem:[#allocation2 + $0xb0] sm:$0xff] }
  0x8d   : > { %v562_v49 = vmul.f32 %v2583_v59, %v2065_v26  ;;  %v1264_v25 = vmax.f32 %v1232_v22, 0.0  ;;  %v679_v24 = vadd.f32 %v647_v60, %v579_v52  ;;  %v847_v46 = vmul.f32 %v2663_v56, %v2071_v30  ;;  %v2755_v60 = vld [vmem:[#allocation2 + $0xb2] sm:$0xff] }
  0x8e   : > { %v1194_v53 = vadd.f32 %v1162_v23, %v1094_v55  ;;  %v979_v4 = vadd.f32 %v947_v19, %v878_v27  ;;  %v948_v7 = vmul.f32 %v2095_v42, %v2736_v34  ;;  %v494_v1 = vadd.f32 %v462_v6, %v394_v9  ;;  %v2757_v19 = vld [vmem:[#allocation2 + $0x168] sm:$0xff] }
  0x8f   : > { %v662_v12 = vmul.f32 %v2665_v31, %v2069_v29  ;;  %1881 = vmatprep.mubr.f32.mxu1 %v1264_v25  ;;  %v779_v59 = vadd.f32 %v747_v2, %v679_v24  ;;  %v1048_v51 = vmul.f32 %v2083_v37, %v3134_v3  ;;  %v762_v17 = vmul.f32 %v2058_v21, %v3131_v5  ;;  %v3135_v55 = vld [vmem:[#allocation14_spill] sm:$0xff] }
  0x90   : > { %v1233_v61 = vadd.f32 %v2245_v35, %v1194_v53  ;;  %v1079_v36 = vadd.f32 %v1047_v0, %v979_v4  ;;  %v594_v41 = vadd.f32 %v562_v49, %v494_v1  ;;  %v395_v40 = vmul.f32 %v2598_v44, %v2042_v15  ;;  %v2776_v4 = vld [vmem:[#allocation2 + $0x16a] sm:$0xff] }
  0x91   : > { %v463_v23 = vmul.f32 %v2056_v20, %v3128_v10  ;;  %v879_v43 = vadd.f32 %v847_v46, %v779_v59  ;;  %v862_v8 = vmul.f32 %v2684_v39, %v2071_v30  ;;  %v563_v18 = vmul.f32 %v2615_v62, %v2065_v26 }
  0x92   : > { %v1265_v45 = vmax.f32 %v1233_v61, 0.0  ;;  %v1179_v63 = vadd.f32 %v1147_v57, %v1079_v36  ;;  %v694_v32 = vadd.f32 %v662_v12, %v594_v41  ;;  %v663_v44 = vmul.f32 %v2690_v14, %v2069_v29  ;;  %v2782_v61 = vld [vmem:[#allocation2 + $0x170] sm:$0xff] }
  0x93   : > { %v495_v0 = vadd.f32 %v463_v23, %v395_v40  ;;  %v980_v10 = vadd.f32 %v948_v7, %v879_v43  ;;  %v1148_v2 = vmul.f32 %v2114_v48, %v2755_v60  ;;  %v963_v22 = vmul.f32 %v2095_v42, %v2757_v19 }
  0x94   : > { %1882 = vmatmul.mubr.f32.gmra.mxu1 %v1265_v45  ;;  %v1063_v62 = vmul.f32 %v2083_v37, %v3135_v55  ;;  %v1218_v52 = vadd.f32 %v2245_v35, %v1179_v63  ;;  %v794_v9 = vadd.f32 %v762_v17, %v694_v32  ;;  %v763_v57 = vmul.f32 %v2058_v21, %v3132_v28  ;;  %v3136_v17 = vld [vmem:[#allocation15_spill] sm:$0xff] }
  0x95   : > { %v595_v27 = vadd.f32 %v563_v18, %v495_v0  ;;  %v1080_v6 = vadd.f32 %v1048_v51, %v980_v10  ;;  %v380_v49 = vmul.f32 %v2621_v13, %v2042_v15  ;;  %v448_v25 = vmul.f32 %v2056_v20, %v3129_v47  ;;  %v2795_v18 = vld [vmem:[#allocation2 + $0x172] sm:$0xff] }
  0x96   : > { %v548_v53 = vmul.f32 %v2634_v50, %v2065_v26  ;;  %v1250_v24 = vmax.f32 %v1218_v52, 0.0  ;;  %v894_v46 = vadd.f32 %v862_v8, %v794_v9  ;;  %v863_v1 = vmul.f32 %v2703_v58, %v2071_v30 }
  0x97   : > { %v695_v7 = vadd.f32 %v663_v44, %v595_v27  ;;  %v1180_v12 = vadd.f32 %v1148_v2, %v1080_v6  ;;  %v1163_v28 = vmul.f32 %v2114_v48, %v2776_v4  ;;  %v480_v13 = vadd.f32 %v448_v25, %v380_v49  ;;  %v2805_v2 = vld [vmem:[#allocation2 + $0xc0] sm:$0xff] }
  0x98   : > { %v648_v47 = vmul.f32 %v2713_v38, %v2069_v29  ;;  %1860 = vmatprep.mubr.f32.mxu0 %v1250_v24  ;;  %v995_v50 = vadd.f32 %v963_v22, %v894_v46  ;;  %v964_v51 = vmul.f32 %v2095_v42, %v2782_v61  ;;  %v1064_v36 = vmul.f32 %v2083_v37, %v3136_v17  ;;  %v2807_v22 = vld [vmem:[#allocation2 + $0xc1] sm:$0xff] }
  0x99   : > { %v795_v59 = vadd.f32 %v763_v57, %v695_v7  ;;  %v1219_v41 = vadd.f32 %v2245_v35, %v1180_v12  ;;  %v580_v40 = vadd.f32 %v548_v53, %v480_v13  ;;  %v748_v23 = vmul.f32 %v2058_v21, %v3133_v11  ;;  %v2820_v57 = vld [vmem:[%s3080_s2] ss:$0 sm:$0xff]  ;;  %v2823_v25 = vld [vmem:[#allocation2 + $0xc2] sm:$0xff] }
  0x9a   : > { %v381_v45 = vmul.f32 %v2644_v16, %v2042_v15  ;;  %v1095_v43 = vadd.f32 %v1063_v62, %v995_v50  ;;  %v449_v63 = vmul.f32 %v2056_v20, %v3130_v33  ;;  %v549_v32 = vmul.f32 %v2663_v56, %v2065_v26  ;;  %v2835_v50 = vld [vmem:[#allocation2 + $0xc8] sm:$0xff] }
  0x9b   : > { %v895_v8 = vadd.f32 %v863_v1, %v795_v59  ;;  %v1251_v0 = vmax.f32 %v1219_v41, 0.0  ;;  %v1164_v35 = vmul.f32 %v2114_v48, %v2795_v18  ;;  %v680_v44 = vadd.f32 %v648_v47, %v580_v40 }
  0x9c   : > { %v848_v11 = vmul.f32 %v2724_v54, %v2071_v30  ;;  %v1195_v10 = vadd.f32 %v1163_v28, %v1095_v43  ;;  %v481_v62 = vadd.f32 %v449_v63, %v381_v45  ;;  %v649_v33 = vmul.f32 %v2736_v34, %v2069_v29 }
  0x9d   : > { %v996_v16 = vadd.f32 %v964_v51, %v895_v8  ;;  %1861 = vmatmul.mubr.f32.gmra.mxu0 %v1251_v0  ;;  %v780_v56 = vadd.f32 %v748_v23, %v680_v44  ;;  %v949_v52 = vmul.f32 %v2095_v42, %v2805_v2  ;;  %v1049_v9 = vmul.f32 %v2083_v37, %v2807_v22  ;;  %v2839_v51 = vld [vmem:[#allocation2 + $0xc9] sm:$0xff]  ;;  %v1936_v8 = vld [vmem:[#allocation2 + $0x159] sm:$0xff] }
  0x9e   : > { %v749_v27 = vmul.f32 %v2058_v21, %v3134_v3  ;;  %v1234_v6 = vadd.f32 %v2820_v57, %v1195_v10  ;;  %v581_v53 = vadd.f32 %v549_v32, %v481_v62  ;;  %v396_v24 = vmul.f32 %v2665_v31, %v2042_v15  ;;  %v2855_v10 = vld [vmem:[#allocation2 + $0xca] sm:$0xff] }
  0x9f   : > { %v1096_v49 = vadd.f32 %v1064_v36, %v996_v16  ;;  %v880_v46 = vadd.f32 %v848_v11, %v780_v56  ;;  %v1149_v7 = vmul.f32 %v2114_v48, %v2823_v25  ;;  %v464_v3 = vmul.f32 %v2056_v20, %v3131_v5  ;;  %v2857_v16 = vld [vmem:[#allocation2 + $0x180] sm:$0xff] }
  0xa0   : > { %v564_v1 = vmul.f32 %v2684_v39, %v2065_v26  ;;  %v1266_v12 = vmax.f32 %v1234_v6, 0.0  ;;  %v681_v13 = vadd.f32 %v649_v33, %v581_v53  ;;  %v849_v47 = vmul.f32 %v2755_v60, %v2071_v30  ;;  %v2868_v53 = vld [vmem:[#allocation2 + $0x171] sm:$0xff] }
  0xa1   : > { %v1196_v28 = vadd.f32 %v1164_v35, %v1096_v49  ;;  %v981_v59 = vadd.f32 %v949_v52, %v880_v46  ;;  %v950_v31 = vmul.f32 %v2095_v42, %v2835_v50  ;;  %v496_v17 = vadd.f32 %v464_v3, %v396_v24  ;;  %v1938_v3 = vld [vmem:[#allocation2 + $0xa9] sm:$0xff] }
  0xa2   : > { %v664_v5 = vmul.f32 %v2757_v19, %v2069_v29  ;;  %1884 = vmatprep.mubr.f32.mxu1 %v1266_v12  ;;  %v781_v36 = vadd.f32 %v749_v27, %v681_v13  ;;  %v1050_v41 = vmul.f32 %v2083_v37, %v2839_v51  ;;  %v764_v40 = vmul.f32 %v2058_v21, %v3135_v55 }
  0xa3   : > { %v1235_v39 = vadd.f32 %v2820_v57, %v1196_v28  ;;  %v1081_v23 = vadd.f32 %v1049_v9, %v981_v59  ;;  %v596_v45 = vadd.f32 %v564_v1, %v496_v17  ;;  %v397_v43 = vmul.f32 %v2690_v14, %v2042_v15  ;;  %v3137_v9 = vld [vmem:[#allocation16_spill] sm:$0xff] }
  0xa4   : > { %v465_v63 = vmul.f32 %v1936_v8, %v2056_v20  ;;  %v881_v0 = vadd.f32 %v849_v47, %v781_v36  ;;  %v864_v35 = vmul.f32 %v2776_v4, %v2071_v30  ;;  %v565_v44 = vmul.f32 %v2703_v58, %v2065_v26  ;;  %v2877_v47 = vld [vmem:[#allocation2 + $0x182] sm:$0xff] }
  0xa5   : > { %v1267_v32 = vmax.f32 %v1235_v39, 0.0  ;;  %v1181_v11 = vadd.f32 %v1149_v7, %v1081_v23  ;;  %v696_v55 = vadd.f32 %v664_v5, %v596_v45  ;;  %v665_v14 = vmul.f32 %v2782_v61, %v2069_v29  ;;  %v2883_v39 = vld [vmem:[#allocation2 + $0x188] sm:$0xff] }
  0xa6   : > { %v497_v62 = vadd.f32 %v465_v63, %v397_v43  ;;  %v982_v33 = vadd.f32 %v950_v31, %v881_v0  ;;  %v1150_v56 = vmul.f32 %v2114_v48, %v2855_v10  ;;  %v965_v52 = vmul.f32 %v2095_v42, %v2857_v16  ;;  %v2889_v23 = vld [vmem:[#allocation2 + $0x189] sm:$0xff] }
  0xa7   : > { %1885 = vmatmul.mubr.f32.gmra.mxu1 %v1267_v32  ;;  %v1065_v58 = vmul.f32 %v2083_v37, %v3137_v9  ;;  %v1220_v27 = vadd.f32 %v2820_v57, %v1181_v11  ;;  %v796_v6 = vadd.f32 %v764_v40, %v696_v55  ;;  %v765_v24 = vmul.f32 %v2868_v53, %v2058_v21  ;;  %v1015_v11 = vld [vmem:[#allocation2 + $0xd9] sm:$0xff]  ;;  %v1940_v55 = vld [vmem:[#allocation2 + $0xb1] sm:$0xff] }
  0xa8   : > { %v597_v49 = vadd.f32 %v565_v44, %v497_v62  ;;  %v1082_v46 = vadd.f32 %v1050_v41, %v982_v33  ;;  %v382_v7 = vmul.f32 %v2713_v38, %v2042_v15  ;;  %v450_v1 = vmul.f32 %v1938_v3, %v2056_v20  ;;  %v915_v44 = vld [vmem:[#allocation2 + $0xd8] sm:$0xff] }
  0xa9   : > { %v550_v12 = vmul.f32 %v2724_v54, %v2065_v26  ;;  %v1252_v28 = vmax.f32 %v1220_v27, 0.0  ;;  %v896_v13 = vadd.f32 %v864_v35, %v796_v6  ;;  %v865_v31 = vmul.f32 %v2795_v18, %v2071_v30  ;;  %v2898_v35 = vld [vmem:[#allocation2 + $0x18a] sm:$0xff] }
  0xaa   : > { %v697_v59 = vadd.f32 %v665_v14, %v597_v49  ;;  %v1182_v17 = vadd.f32 %v1150_v56, %v1082_v46  ;;  %v1165_v5 = vmul.f32 %v2114_v48, %v2877_v47  ;;  %v482_v38 = vadd.f32 %v450_v1, %v382_v7  ;;  %v916_v1 = vld [vmem:[#allocation2 + $0xe0] sm:$0xff] }
  0xab   : > { %v650_v36 = vmul.f32 %v2805_v2, %v2069_v29  ;;  %1863 = vmatprep.mubr.f32.mxu0 %v1252_v28  ;;  %v997_v54 = vadd.f32 %v965_v52, %v896_v13  ;;  %v966_v40 = vmul.f32 %v2095_v42, %v2883_v39  ;;  %v1066_v45 = vmul.f32 %v2889_v23, %v2083_v37  ;;  %v1016_v13 = vld [vmem:[#allocation2 + $0xe1] sm:$0xff] }
  0xac   : > { %v797_v41 = vadd.f32 %v765_v24, %v697_v59  ;;  %v1221_v43 = vadd.f32 %v2820_v57, %v1182_v17  ;;  %v582_v8 = vadd.f32 %v550_v12, %v482_v38  ;;  %v750_v63 = vmul.f32 %v2807_v22, %v2058_v21  ;;  %v1941_v59 = vld [vmem:[#allocation2 + $0x169] sm:$0xff] }
  0xad   : > { %v383_v2 = vmul.f32 %v2736_v34, %v2042_v15  ;;  %v1097_v32 = vadd.f32 %v1065_v58, %v997_v54  ;;  %v451_v62 = vmul.f32 %v1940_v55, %v2056_v20  ;;  %v551_v14 = vmul.f32 %v2755_v60, %v2065_v26  ;;  %v1115_v58 = vld [vmem:[#allocation2 + $0xda] sm:$0xff] }
  0xae   : > { %v897_v0 = vadd.f32 %v865_v31, %v797_v41  ;;  %v1253_v33 = vmax.f32 %v1221_v43, 0.0  ;;  %v1166_v56 = vmul.f32 %v2114_v48, %v2898_v35  ;;  %v682_v22 = vadd.f32 %v650_v36, %v582_v8  ;;  %v1942_v8 = vld [vmem:[#allocation2 + $0x181] sm:$0xff] }
  0xaf   : > { %v850_v34 = vmul.f32 %v2823_v25, %v2071_v30  ;;  %v1197_v52 = vadd.f32 %v1165_v5, %v1097_v32  ;;  %v483_v27 = vadd.f32 %v451_v62, %v383_v2  ;;  %v651_v6 = vmul.f32 %v2835_v50, %v2069_v29  ;;  %v1116_v32 = vld [vmem:[#allocation2 + $0xe2] sm:$0xff] }
  0xb0   : > { %v998_v9 = vadd.f32 %v966_v40, %v897_v0  ;;  %1864 = vmatmul.mubr.f32.gmra.mxu0 %v1253_v33  ;;  %v782_v49 = vadd.f32 %v750_v63, %v682_v22  ;;  %v951_v24 = vmul.f32 %v2095_v42, %v915_v44  ;;  %v1051_v60 = vmul.f32 %v2083_v37, %v1015_v11 }
  0xb1   : > { %v751_v46 = vmul.f32 %v2839_v51, %v2058_v21  ;;  %v1236_v7 = vadd.f32 %v2820_v57, %v1197_v52  ;;  %v583_v25 = vadd.f32 %v551_v14, %v483_v27  ;;  %v398_v12 = vmul.f32 %v2757_v19, %v2042_v15 }
  0xb2   : > { %v1098_v3 = vadd.f32 %v1066_v45, %v998_v9  ;;  %v882_v28 = vadd.f32 %v850_v34, %v782_v49  ;;  %v1151_v50 = vmul.f32 %v2114_v48, %v1115_v58  ;;  %v466_v31 = vmul.f32 %v1941_v59, %v2056_v20  ;;  %v2949_v9 = vld [vmem:[%s3082_s4] sm:$0x1] }
  0xb3   : > { %v566_v17 = vmul.f32 %v2776_v4, %v2065_v26  ;;  %v1268_v5 = vmax.f32 %v1236_v7, 0.0  ;;  %v683_v38 = vadd.f32 %v651_v6, %v583_v25  ;;  %v851_v36 = vmul.f32 %v2855_v10, %v2071_v30  ;;  %v1131_v58 = vld [vmem:[#allocation2 + $0x19a] sm:$0xff]  ;;  %v1132_v25 = vld [vmem:[#allocation2 + $0x1a2] sm:$0xff] }
  0xb4   : > { %v1198_v51 = vadd.f32 %v1166_v56, %v1098_v3  ;;  %v983_v54 = vadd.f32 %v951_v24, %v882_v28  ;;  %v952_v41 = vmul.f32 %v2095_v42, %v916_v1  ;;  %v498_v19 = vadd.f32 %v466_v31, %v398_v12  ;;  %v1031_v56 = vld [vmem:[#allocation2 + $0x199] sm:$0xff]  ;;  %v1032_v24 = vld [vmem:[#allocation2 + $0x1a1] sm:$0xff] }
  0xb5   : > { %v666_v40 = vmul.f32 %v2857_v16, %v2069_v29  ;;  %1887 = vmatprep.mubr.f32.mxu1 %v1268_v5  ;;  %v783_v43 = vadd.f32 %v751_v46, %v683_v38  ;;  %v1052_v4 = vmul.f32 %v2083_v37, %v1016_v13  ;;  %v766_v63 = vmul.f32 %v1942_v8, %v2058_v21 }
  0xb6   : > { %v1237_v45 = vadd.f32 %v2820_v57, %v1198_v51  ;;  %v1083_v2 = vadd.f32 %v1051_v60, %v983_v54  ;;  %v598_v10 = vadd.f32 %v566_v17, %v498_v19  ;;  %v399_v0 = vmul.f32 %v2782_v61, %v2042_v15  ;;  %v1943_v61 = vld [vmem:[#allocation2] sm:$0xff]  ;;  %v3138_v60 = vld [vmem:[#allocation3_spill] sm:$0xff] }
  0xb7   : > { %v467_v44 = vmul.f32 %v2868_v53, %v2056_v20  ;;  %v883_v11 = vadd.f32 %v851_v36, %v783_v43  ;;  %v866_v55 = vmul.f32 %v2877_v47, %v2071_v30  ;;  %v567_v62 = vmul.f32 %v2795_v18, %v2065_v26 }
  0xb8   : > { %v1269_v16 = vmax.f32 %v1237_v45, 0.0  ;;  %v1183_v14 = vadd.f32 %v1151_v50, %v1083_v2  ;;  %v698_v33 = vadd.f32 %v666_v40, %v598_v10  ;;  %v667_v34 = vmul.f32 %v2883_v39, %v2069_v29 }
  0xb9   : > { %v499_v22 = vadd.f32 %v467_v44, %v399_v0  ;;  %v984_v15 = vadd.f32 %v952_v41, %v883_v11  ;;  %v1152_v20 = vmul.f32 %v2114_v48, %v1116_v32  ;;  %v2941_v53 = vmul.f32 %v1943_v61, %v2095_v42 }
  0xba   : > { %1888 = vmatmul.mubr.f32.gmra.mxu1 %v1269_v16  ;;  %v1222_v47 = vadd.f32 %v2820_v57, %v1183_v14  ;;  %v798_v52 = vadd.f32 %v766_v63, %v698_v33  ;;  %v767_v18 = vmul.f32 %v2889_v23, %v2058_v21  ;;  %v1067_v39 = vmul.f32 %v2083_v37, %v1031_v56 }
  0xbb   : > { %v599_v26 = vadd.f32 %v567_v62, %v499_v22  ;;  %v1084_v29 = vadd.f32 %v1052_v4, %v984_v15  ;;  %v1552_v27 = vmax.f32 %v2949_v9, 0.0  ;;  %v867_v6 = vmul.f32 %v2898_v35, %v2071_v30 }
  0xbc   : > { %v1254_v21 = vmax.f32 %v1222_v47, 0.0  ;;  %v898_v42 = vadd.f32 %v866_v55, %v798_v52  ;;  %v1167_v35 = vmul.f32 %v2114_v48, %v1131_v58  ;;  %v1068_v28 = vmul.f32 %v2083_v37, %v1032_v24 }
  0xbd   : > { %v699_v23 = vadd.f32 %v667_v34, %v599_v26  ;;  %v1184_v49 = vadd.f32 %v1152_v20, %v1084_v29  ;;  %v1557_v46 = vrot.slane %v1552_v27, %v3138_v60  ;;  %1698 = vst [vmem:[%s2956_s25 + $0x18] sm:$0x1] %v1552_v27  ;;  %1699 = vst [vmem:[%s2956_s25 + $0x30] sm:$0x1] %v1552_v27 }
  0xbe   : > { %1700 = vst [vmem:[%s2956_s25 + $0x48] sm:$0x1] %v1552_v27  ;;  %1701 = vst [vmem:[%s2956_s25 + $0x60] sm:$0x1] %v1552_v27  ;;  %1866 = vmatprep.mubr.f32.mxu0 %v1254_v21  ;;  %v999_v30 = vadd.f32 %v2941_v53, %v898_v42  ;;  %v1168_v31 = vmul.f32 %v2114_v48, %v1132_v25  ;;  %v3009_v37 = vrot.slane %v2949_v9, %v3138_v60 }
  0xbf   : > { %1702 = vst [vmem:[%s2956_s25 + $0x78] sm:$0x1] %v1552_v27  ;;  %1703 = vst [vmem:[%s2956_s25 + $0x90] sm:$0x1] %v1552_v27  ;;  %v799_v7 = vadd.f32 %v767_v18, %v699_v23  ;;  %v1223_v3 = vadd.f32 %v2820_v57, %v1184_v49 }
  0xc0   : > { %1704 = vst [vmem:[%s2956_s25 + $0xa8] sm:$0x1] %v1552_v27  ;;  %1705 = vst [vmem:[%s2956_s25 + $0xc0] sm:$0x1] %v1552_v27  ;;  %v1099_v1 = vadd.f32 %v1067_v39, %v999_v30 }
  0xc1   : > { %1706 = vst [vmem:[%s2956_s25 + $0xd8] sm:$0x1] %v1552_v27  ;;  %1707 = vst [vmem:[%s2956_s25 + $0xf0] sm:$0x1] %v1552_v27  ;;  %v899_v12 = vadd.f32 %v867_v6, %v799_v7  ;;  %v1255_v50 = vmax.f32 %v1223_v3, 0.0 }
  0xc2   : > { %1708 = vst [vmem:[%s2956_s25 + $0x108] sm:$0x1] %v1552_v27  ;;  %1709 = vst [vmem:[%s2956_s25 + $0x120] sm:$0x1] %v1552_v27  ;;  %v1199_v13 = vadd.f32 %v1167_v35, %v1099_v1 }
  0xc3   : > { %1710 = vst [vmem:[%s2956_s25 + $0x138] sm:$0x1] %v1552_v27  ;;  %1711 = vst [vmem:[%s2956_s25 + $0x150] sm:$0x1] %v1552_v27  ;;  %v1000_v59 = vadd.f32 %v2941_v53, %v899_v12  ;;  %1867 = vmatmul.mubr.f32.gmra.mxu0 %v1255_v50 }
  0xc4   : > { %1712 = vst [vmem:[%s2956_s25 + $0x168] sm:$0x1] %v1552_v27  ;;  %1713 = vst [vmem:[%s2956_s25 + $0x180] sm:$0x1] %v1552_v27  ;;  %v1238_v17 = vadd.f32 %v2820_v57, %v1199_v13 }
  0xc5   : > { %1714 = vst [vmem:[%s2956_s25 + $0x29] sm:$0x1] %v1552_v27  ;;  %1715 = vst [vmem:[%s2956_s25 + $0x41] sm:$0x1] %v1552_v27  ;;  %v1100_v5 = vadd.f32 %v1068_v28, %v1000_v59 }
  0xc6   : > { %1716 = vst [vmem:[%s2956_s25 + $0x59] sm:$0x1] %v1552_v27  ;;  %1717 = vst [vmem:[%s2956_s25 + $0x71] sm:$0x1] %v1552_v27  ;;  %v1270_v51 = vmax.f32 %v1238_v17, 0.0 }
  0xc7   : > { %1718 = vst [vmem:[%s2956_s25 + $0x89] sm:$0x1] %v1552_v27  ;;  %1719 = vst [vmem:[%s2956_s25 + $0xa1] sm:$0x1] %v1552_v27  ;;  %v1200_v38 = vadd.f32 %v1168_v31, %v1100_v5 }
  0xc8   : > { %1720 = vst [vmem:[%s2956_s25 + $0xb9] sm:$0x1] %v1552_v27  ;;  %1721 = vst [vmem:[%s2956_s25 + $0xd1] sm:$0x1] %v1552_v27  ;;  %1890 = vmatprep.mubr.f32.mxu1 %v1270_v51 }
  0xc9   : > { %1722 = vst [vmem:[%s2956_s25 + $0xe9] sm:$0x1] %v1552_v27  ;;  %1723 = vst [vmem:[%s2956_s25 + $0x101] sm:$0x1] %v1552_v27  ;;  %v1239_v36 = vadd.f32 %v2820_v57, %v1200_v38 }
  0xca   : > { %1724 = vst [vmem:[%s2956_s25 + $0x119] sm:$0x1] %v1552_v27  ;;  %1725 = vst [vmem:[%s2956_s25 + $0x131] sm:$0x1] %v1552_v27 }
  0xcb   : > { %1726 = vst [vmem:[%s2956_s25 + $0x149] sm:$0x1] %v1552_v27  ;;  %1727 = vst [vmem:[%s2956_s25 + $0x161] sm:$0x1] %v1552_v27  ;;  %v1271_v54 = vmax.f32 %v1239_v36, 0.0 }
  0xcc   : > { %1728 = vst [vmem:[%s2956_s25 + $0x179] sm:$0x1] %v1552_v27  ;;  %1729 = vst [vmem:[%s2956_s25 + $0x191] sm:$0x1] %v1552_v27 }
  0xcd   : > { %1559 = vst [vmem:[%s2956_s25] sm:$0xff] %v1557_v46  ;;  %1560 = vst [vmem:[%s2956_s25 + $0x8] sm:$0xff] %v1557_v46  ;;  %1891 = vmatmul.mubr.f32.gmra.mxu1 %v1271_v54 }
  0xce   : > { %1561 = vst [vmem:[%s2956_s25 + $0x10] sm:$0x3] %v1557_v46  ;;  %1695 = vst [vmem:[%s2956_s25 + $0x198] sm:$0xff] %v1557_v46 }
  0xcf   : > { %1696 = vst [vmem:[%s2956_s25 + $0x1a0] sm:$0xff] %v1557_v46  ;;  %1697 = vst [vmem:[%s2956_s25 + $0x1a8] sm:$0x3] %v1557_v46 }
  0xfb   : > { %v1847_v48 = vpop.f32.mrf.mxu0 }
  0xfc   : > { %v1367_v41 = vadd.f32 %v1847_v48, %v3009_v37 }
  0xfd   : > { %v1361_v19 = vpop.f32.mrf.mxu0 }
  0xfe   : > { %v1521_v40 = vmax.f32 %v1367_v41, 0.0  ;;  %v1362_v45 = vadd.f32 %v1361_v19, %v3009_v37 }
 0x100   : > { %1731 = vst [vmem:[%s2956_s25 + $0x21] sm:$0xff] %v1521_v40  ;;  %v1520_v43 = vmax.f32 %v1362_v45, 0.0 }
 0x102   : > { %1730 = vst [vmem:[%s2956_s25 + $0x19] sm:$0xff] %v1520_v43 }
 0x105   : > { %v1871_v57 = vpop.f32.mrf.mxu1 }
 0x106   : > { %v1447_v4 = vadd.f32 %v1871_v57, %v3009_v37 }
 0x107   : > { %v1441_v8 = vpop.f32.mrf.mxu1 }
 0x108   : > { %v1537_v63 = vmax.f32 %v1447_v4, 0.0  ;;  %v1442_v2 = vadd.f32 %v1441_v8, %v3009_v37 }
 0x10a   : > { %1747 = vst [vmem:[%s2956_s25 + $0xe1] sm:$0xff] %v1537_v63  ;;  %v1536_v32 = vmax.f32 %v1442_v2, 0.0 }
 0x10c   : > { %1746 = vst [vmem:[%s2956_s25 + $0xd9] sm:$0xff] %v1536_v32 }
 0x113   : > { %v1850_v10 = vpop.f32.mrf.mxu0 }
 0x114   : > { %v1377_v0 = vadd.f32 %v1850_v10, %v3009_v37 }
 0x115   : > { %v1371_v44 = vpop.f32.mrf.mxu0 }
 0x116   : > { %v1523_v16 = vmax.f32 %v1377_v0, 0.0  ;;  %v1372_v11 = vadd.f32 %v1371_v44, %v3009_v37 }
 0x118   : > { %1733 = vst [vmem:[%s2956_s25 + $0x39] sm:$0xff] %v1523_v16  ;;  %v1522_v55 = vmax.f32 %v1372_v11, 0.0 }
 0x11a   : > { %1732 = vst [vmem:[%s2956_s25 + $0x31] sm:$0xff] %v1522_v55 }
 0x11b   : > { %v1874_v62 = vpop.f32.mrf.mxu1 }
 0x11c   : > { %v1457_v14 = vadd.f32 %v1874_v62, %v3009_v37 }
 0x11d   : > { %v1451_v33 = vpop.f32.mrf.mxu1 }
 0x11e   : > { %v1539_v56 = vmax.f32 %v1457_v14, 0.0  ;;  %v1452_v22 = vadd.f32 %v1451_v33, %v3009_v37 }
 0x120   : > { %1749 = vst [vmem:[%s2956_s25 + $0xf9] sm:$0xff] %v1539_v56  ;;  %v1538_v34 = vmax.f32 %v1452_v22, 0.0 }
 0x122   : > { %1748 = vst [vmem:[%s2956_s25 + $0xf1] sm:$0xff] %v1538_v34 }
 0x124   : > { %v1853_v15 = vpop.f32.mrf.mxu0 }
 0x125   : > { %v1387_v20 = vadd.f32 %v1853_v15, %v3009_v37 }
 0x126   : > { %v1381_v61 = vpop.f32.mrf.mxu0 }
 0x127   : > { %v1525_v53 = vmax.f32 %v1387_v20, 0.0  ;;  %v1382_v47 = vadd.f32 %v1381_v61, %v3009_v37 }
 0x129   : > { %1735 = vst [vmem:[%s2956_s25 + $0x51] sm:$0xff] %v1525_v53  ;;  %v1524_v52 = vmax.f32 %v1382_v47, 0.0 }
 0x12b   : > { %1734 = vst [vmem:[%s2956_s25 + $0x49] sm:$0xff] %v1524_v52 }
 0x12f   : > { %v1877_v26 = vpop.f32.mrf.mxu1 }
 0x130   : > { %v1467_v18 = vadd.f32 %v1877_v26, %v3009_v37 }
 0x131   : > { %v1461_v9 = vpop.f32.mrf.mxu1 }
 0x132   : > { %v1541_v29 = vmax.f32 %v1467_v18, 0.0  ;;  %v1462_v39 = vadd.f32 %v1461_v9, %v3009_v37 }
 0x134   : > { %1751 = vst [vmem:[%s2956_s25 + $0x111] sm:$0xff] %v1541_v29  ;;  %v1540_v58 = vmax.f32 %v1462_v39, 0.0 }
 0x136   : > { %1750 = vst [vmem:[%s2956_s25 + $0x109] sm:$0xff] %v1540_v58 }
 0x138   : > { %v1856_v27 = vpop.f32.mrf.mxu0 }
 0x139   : > { %v1397_v21 = vadd.f32 %v1856_v27, %v3009_v37 }
 0x13a   : > { %v1391_v42 = vpop.f32.mrf.mxu0 }
 0x13b   : > { %v1527_v23 = vmax.f32 %v1397_v21, 0.0  ;;  %v1392_v6 = vadd.f32 %v1391_v42, %v3009_v37 }
 0x13d   : > { %1737 = vst [vmem:[%s2956_s25 + $0x69] sm:$0xff] %v1527_v23  ;;  %v1526_v49 = vmax.f32 %v1392_v6, 0.0 }
 0x13f   : > { %1736 = vst [vmem:[%s2956_s25 + $0x61] sm:$0xff] %v1526_v49 }
 0x141   : > { %v1880_v24 = vpop.f32.mrf.mxu1 }
 0x142   : > { %v1477_v60 = vadd.f32 %v1880_v24, %v3009_v37 }
 0x143   : > { %v1471_v46 = vpop.f32.mrf.mxu1 }
 0x144   : > { %v1543_v30 = vmax.f32 %v1477_v60, 0.0  ;;  %v1472_v35 = vadd.f32 %v1471_v46, %v3009_v37 }
 0x146   : > { %1753 = vst [vmem:[%s2956_s25 + $0x129] sm:$0xff] %v1543_v30  ;;  %v1542_v7 = vmax.f32 %v1472_v35, 0.0 }
 0x148   : > { %1752 = vst [vmem:[%s2956_s25 + $0x121] sm:$0xff] %v1542_v7 }
 0x14a   : > { %v1859_v3 = vpop.f32.mrf.mxu0 }
 0x14b   : > { %v1407_v25 = vadd.f32 %v1859_v3, %v3009_v37 }
 0x14c   : > { %v1401_v1 = vpop.f32.mrf.mxu0 }
 0x14d   : > { %v1529_v12 = vmax.f32 %v1407_v25, 0.0  ;;  %v1402_v28 = vadd.f32 %v1401_v1, %v3009_v37 }
 0x14f   : > { %1739 = vst [vmem:[%s2956_s25 + $0x81] sm:$0xff] %v1529_v12  ;;  %v1528_v50 = vmax.f32 %v1402_v28, 0.0 }
 0x151   : > { %1738 = vst [vmem:[%s2956_s25 + $0x79] sm:$0xff] %v1528_v50 }
 0x154   : > { %v1883_v13 = vpop.f32.mrf.mxu1 }
 0x155   : > { %v1487_v59 = vadd.f32 %v1883_v13, %v3009_v37 }
 0x156   : > { %v1481_v31 = vpop.f32.mrf.mxu1 }
 0x157   : > { %v1545_v17 = vmax.f32 %v1487_v59, 0.0  ;;  %v1482_v5 = vadd.f32 %v1481_v31, %v3009_v37 }
 0x159   : > { %1755 = vst [vmem:[%s2956_s25 + $0x141] sm:$0xff] %v1545_v17  ;;  %v1544_v51 = vmax.f32 %v1482_v5, 0.0 }
 0x15b   : > { %1754 = vst [vmem:[%s2956_s25 + $0x139] sm:$0xff] %v1544_v51 }
 0x15d   : > { %v1862_v38 = vpop.f32.mrf.mxu0 }
 0x15e   : > { %v1417_v36 = vadd.f32 %v1862_v38, %v3009_v37 }
 0x15f   : > { %v1411_v54 = vpop.f32.mrf.mxu0 }
 0x160   : > { %v1531_v48 = vmax.f32 %v1417_v36, 0.0  ;;  %v1412_v41 = vadd.f32 %v1411_v54, %v3009_v37 }
 0x162   : > { %1741 = vst [vmem:[%s2956_s25 + $0x99] sm:$0xff] %v1531_v48  ;;  %v1530_v19 = vmax.f32 %v1412_v41, 0.0 }
 0x164   : > { %1740 = vst [vmem:[%s2956_s25 + $0x91] sm:$0xff] %v1530_v19 }
 0x167   : > { %v1886_v40 = vpop.f32.mrf.mxu1 }
 0x168   : > { %v1497_v45 = vadd.f32 %v1886_v40, %v3009_v37 }
 0x169   : > { %v1491_v43 = vpop.f32.mrf.mxu1 }
 0x16a   : > { %v1547_v57 = vmax.f32 %v1497_v45, 0.0  ;;  %v1492_v4 = vadd.f32 %v1491_v43, %v3009_v37 }
 0x16c   : > { %1757 = vst [vmem:[%s2956_s25 + $0x159] sm:$0xff] %v1547_v57  ;;  %v1546_v8 = vmax.f32 %v1492_v4, 0.0 }
 0x16e   : > { %1756 = vst [vmem:[%s2956_s25 + $0x151] sm:$0xff] %v1546_v8 }
 0x170   : > { %v1865_v63 = vpop.f32.mrf.mxu0 }
 0x171   : > { %v1427_v2 = vadd.f32 %v1865_v63, %v3009_v37 }
 0x172   : > { %v1421_v32 = vpop.f32.mrf.mxu0 }
 0x173   : > { %v1533_v10 = vmax.f32 %v1427_v2, 0.0  ;;  %v1422_v0 = vadd.f32 %v1421_v32, %v3009_v37 }
 0x175   : > { %1743 = vst [vmem:[%s2956_s25 + $0xb1] sm:$0xff] %v1533_v10  ;;  %v1532_v44 = vmax.f32 %v1422_v0, 0.0 }
 0x177   : > { %1742 = vst [vmem:[%s2956_s25 + $0xa9] sm:$0xff] %v1532_v44 }
 0x17a   : > { %v1889_v16 = vpop.f32.mrf.mxu1 }
 0x17b   : > { %v1507_v11 = vadd.f32 %v1889_v16, %v3009_v37 }
 0x17c   : > { %v1501_v55 = vpop.f32.mrf.mxu1 }
 0x17d   : > { %v1549_v62 = vmax.f32 %v1507_v11, 0.0  ;;  %v1502_v14 = vadd.f32 %v1501_v55, %v3009_v37 }
 0x17f   : > { %1759 = vst [vmem:[%s2956_s25 + $0x171] sm:$0xff] %v1549_v62  ;;  %v1548_v33 = vmax.f32 %v1502_v14, 0.0 }
 0x181   : > { %1758 = vst [vmem:[%s2956_s25 + $0x169] sm:$0xff] %v1548_v33 }
 0x183   : > { %v1868_v56 = vpop.f32.mrf.mxu0 }
 0x184   : > { %v1437_v22 = vadd.f32 %v1868_v56, %v3009_v37 }
 0x185   : > { %v1431_v34 = vpop.f32.mrf.mxu0 }
 0x186   : > { %v1535_v15 = vmax.f32 %v1437_v22, 0.0  ;;  %v1432_v20 = vadd.f32 %v1431_v34, %v3009_v37 }
 0x188   : > { %1745 = vst [vmem:[%s2956_s25 + $0xc9] sm:$0xff] %v1535_v15  ;;  %v1534_v61 = vmax.f32 %v1432_v20, 0.0 }
 0x18a   : > { %1744 = vst [vmem:[%s2956_s25 + $0xc1] sm:$0xff] %v1534_v61 }
 0x18d   : > { %v1892_v53 = vpop.f32.mrf.mxu1 }
 0x18e   : > { %v1517_v47 = vadd.f32 %v1892_v53, %v3009_v37 }
 0x18f   : > { %v1511_v52 = vpop.f32.mrf.mxu1 }
 0x190   : > { %v1551_v26 = vmax.f32 %v1517_v47, 0.0  ;;  %v1512_v18 = vadd.f32 %v1511_v52, %v3009_v37 }
 0x192   : > { %1761 = vst [vmem:[%s2956_s25 + $0x189] sm:$0xff] %v1551_v26  ;;  %v1550_v9 = vmax.f32 %v1512_v18, 0.0 }
 0x194   : > { %1760 = vst [vmem:[%s2956_s25 + $0x181] sm:$0xff] %v1550_v9 }
 0x195 PF: > { %s15_s18 = sadd.s32 1, %s1950_s18  }
 0x196   : > { %p12_p4 = scmp.ge.s32.totalorder %s15_s18, 4  }
 0x198   :  { %14 = sbr.rel (!%p12_p4) target bundleno = 1 (0x1), region = 75 }

</bundles_post_ra>
